<compile_context>
chip_gen: v7x
topology: tpu7x:2x2x1
jax: 0.10.0
libtpu: 0.0.40
codegen_flags: <defaults>
</compile_context>

<pallas_src>
import functools

import jax
import jax.numpy as jnp
from jax.experimental import pallas as pl
from jax.experimental.pallas import tpu as pltpu

_NEG_LARGE = -1e30  # finite "minus infinity" for masked / initial running max


def _vmem_budget_bytes():
    """Portable per-core VMEM budget (v5e/v6e: 128 MiB, v7x: 64 MiB)."""
    try:
        phys = int(pltpu.get_tpu_info().vmem_capacity_bytes)
    except Exception:
        phys = 64 * 1024 * 1024  # assume the smallest generation if unknown
    # Leave headroom for compiler-internal scratch.
    return int(min(phys - 16 * 1024 * 1024, 100 * 1024 * 1024))


def _padded_nbytes(a):
    """VMEM footprint estimate of a resident 2-D array ((8|16),128 tiling)."""
    r, c = a.shape
    item = jnp.dtype(a.dtype).itemsize
    sub = max(8, 32 // item)                      # bf16 packs 16 sublanes
    return (-(-r // sub) * sub) * (-(-c // 128) * 128) * item


def _pick_tile_n(n, l0, l1, d, h_bytes, mm_bytes, resident_bytes, budget_bytes):
    """Largest N-tile whose full working set fits the VMEM budget.

    Tiles are multiples of 128 (lane-dense attention_raw blocks) unless a
    single tile covers the whole bag.
    """
    n8 = max(8, ((n + 7) // 8) * 8)
    if n8 <= 128:
        return n8                                  # one tile covers the bag
    per_row = (2 * l0 * h_bytes                    # double-buffered h stream
               + l1 * (8 + mm_bytes)               # h1 (f32) + h1_mm + margin
               + 20 * d)                           # ab_pre + a + b + a*b (f32)
    avail = int(budget_bytes * 0.8) - resident_bytes - (1 << 20)
    for tn in (4096, 2048, 1024, 512, 256, 128):
        if tn >= 2 * n8:
            continue                               # pointlessly larger than bag
        if tn * per_row <= avail:
            return tn
    return 128


def _chief_kernel(h_ref, wfc_ref, bfc_ref, wab_ref, bab_ref,
                  wc_row_ref, bc_ref, wcls_ref, bcls_ref,
                  logits_ref, araw_ref, m_out_ref,
                  acc_ref, m_run_ref, l_run_ref,
                  *, tile_n, d, n_valid, mask_tail):
    i = pl.program_id(0)

    @pl.when(i == 0)
    def _init():
        acc_ref[...] = jnp.zeros_like(acc_ref)
        l_run_ref[...] = jnp.zeros_like(l_run_ref)
        m_run_ref[...] = jnp.full_like(m_run_ref, _NEG_LARGE)

    # fc: Linear(L0, L1) + ReLU.  h streams in its native dtype; cast to the
    # MXU dtype here (hidden under MXU work, saves a wrapper HBM pass).
    # TODO(synk): training-mode Dropout(0.25) not implemented (eval semantics).
    h_blk = h_ref[...].astype(wfc_ref.dtype)
    h1 = (jnp.dot(h_blk, wfc_ref[...], preferred_element_type=jnp.float32)
          + bfc_ref[...])
    h1 = jnp.maximum(h1, 0.0)                                    # (TN, L1) f32

    if mask_tail:
        # Ragged last block of h may contain undefined (even NaN/Inf) rows;
        # zero those h1 rows so they cannot poison p @ h1 or the gate path.
        base = i * tile_n
        row = jax.lax.broadcasted_iota(jnp.int32, (tile_n, 1), 0)
        h1 = jnp.where(base + row < n_valid, h1, 0.0)

    # Attn_Net_Gated with fused W_a|W_b: one MXU pass, slice, gate.
    # TODO(synk): bf16 tanh inputs on v6e/v7x (bf16 EUP) would halve EUP cost.
    h1_mm = h1.astype(wab_ref.dtype)
    ab_pre = (jnp.dot(h1_mm, wab_ref[...], preferred_element_type=jnp.float32)
              + bab_ref[...])                                    # (TN, 2D) f32
    gate_a = jnp.tanh(ab_pre[:, :d])
    gate_b = 0.5 * jnp.tanh(0.5 * ab_pre[:, d:]) + 0.5           # 1-EUP sigmoid
    ab = gate_a * gate_b                                         # (TN, D) f32

    # attention_c (Linear(D, 1)) directly in lane-dense layout:
    #   s[0, j] = w_c . ab[j, :] + b_c   ->  (1, D) x (TN, D)^T on the MXU.
    s = (jax.lax.dot_general(wc_row_ref[...], ab,
                             (((1,), (1,)), ((), ())),
                             preferred_element_type=jnp.float32)
         + bc_ref[...])                                          # (1, TN)

    # Lane-dense raw-attention write; wrapper slices off padded lanes.
    araw_ref[...] = s

    if mask_tail:
        lane = jax.lax.broadcasted_iota(jnp.int32, (1, tile_n), 1)
        s_soft = jnp.where(base + lane < n_valid, s, _NEG_LARGE)
    else:
        s_soft = s

    # Online softmax across N tiles; p @ h1 contraction runs on the MXU (f32).
    m_prev = m_run_ref[...]                                      # (1, 1)
    m_new = jnp.maximum(m_prev, jnp.max(s_soft, axis=1, keepdims=True))
    alpha = jnp.exp(m_prev - m_new)                              # (1, 1)
    p = jnp.exp(s_soft - m_new)                                  # (1, TN)
    l_run_ref[...] = alpha * l_run_ref[...] + jnp.sum(p, axis=1, keepdims=True)
    acc_ref[...] = (alpha * acc_ref[...]
                    + jnp.dot(p, h1, preferred_element_type=jnp.float32))
    m_run_ref[...] = m_new

    @pl.when(i == pl.num_programs(0) - 1)
    def _finalize():
        m_bag = acc_ref[...] / l_run_ref[...]                    # (1, L1)
        m_out_ref[...] = m_bag
        logits_ref[...] = (
            jnp.dot(m_bag, wcls_ref[...], preferred_element_type=jnp.float32)
            + bcls_ref[...])


def chief_survival_forward(h, params, *, use_bf16=True, tile_n=None):
    """Fused CHIEF_survival forward pass (single pallas_call, N-tiled)."""
    n, l0 = h.shape
    l1 = params["w_fc"].shape[1]
    d = params["w_a"].shape[1]
    n_classes = params["w_cls"].shape[1]

    mm_dtype = jnp.bfloat16 if use_bf16 else jnp.float32

    # Fuse the two gated-attention weights into one (L1, 2D) matmul operand.
    w_ab = jnp.concatenate([params["w_a"], params["w_b"]], axis=1)
    b_ab = jnp.concatenate([params["b_a"], params["b_b"]], axis=1)

    # MXU weight operands in bf16 (fast path); biases / gate / softmax f32.
    args = (h,
            params["w_fc"].astype(mm_dtype), params["b_fc"],
            w_ab.astype(mm_dtype), b_ab,
            params["w_c"].reshape(1, d).astype(jnp.float32), params["b_c"],
            params["w_cls"].astype(jnp.float32), params["b_cls"])

    budget = _vmem_budget_bytes()
    resident = sum(_padded_nbytes(a) for a in args[1:])

    if tile_n is not None:
        tn = max(8, -(-int(tile_n) // 8) * 8)
        if tn < n and tn % 128 != 0:
            tn = -(-tn // 128) * 128   # lane-dense araw blocks need %128 tiles
    else:
        tn = _pick_tile_n(n, l0, l1, d, jnp.dtype(h.dtype).itemsize,
                          jnp.dtype(mm_dtype).itemsize, resident, budget)

    n_steps = -(-n // tn)
    n_pad = n_steps * tn

    # h streams over N tiles (double-buffered); weights/biases are whole-array
    # VMEM residents (single buffer, loaded once for the entire grid).
    in_specs = [pl.BlockSpec((tn, l0), lambda i: (i, 0))]
    in_specs += [pl.BlockSpec(memory_space=pltpu.MemorySpace.VMEM)
                 for _ in args[1:]]

    out_shape = (jax.ShapeDtypeStruct((1, n_classes), jnp.float32),
                 jax.ShapeDtypeStruct((1, n_pad), jnp.float32),
                 jax.ShapeDtypeStruct((1, l1), jnp.float32))
    out_specs = (pl.BlockSpec((1, n_classes), lambda i: (0, 0)),
                 pl.BlockSpec((1, tn), lambda i: (0, i)),
                 pl.BlockSpec((1, l1), lambda i: (0, 0)))

    kernel = functools.partial(_chief_kernel, tile_n=tn, d=d, n_valid=n,
                               mask_tail=(n_pad != n))

    # TODO(synk): two-pass variant (per-core partial m/l/acc + tiny combine)
    # to shard the N axis across v7x's two TensorCores.
    logits, scores_row, m = pl.pallas_call(
        kernel,
        grid=(n_steps,),
        in_specs=in_specs,
        out_specs=out_specs,
        out_shape=out_shape,
        scratch_shapes=[pltpu.VMEM((1, l1), jnp.float32),   # unnormalized M
                        pltpu.VMEM((1, 1), jnp.float32),    # running max
                        pltpu.VMEM((1, 1), jnp.float32)],   # running denom
        compiler_params=pltpu.CompilerParams(
            dimension_semantics=("arbitrary",),
            vmem_limit_bytes=budget),
    )(*args)

    a_raw = scores_row[:, :n]    # drop padded lanes (cheap lane slice)
    return {"bag_logits": logits, "attention_raw": a_raw, "M": m}


def init_params(key, size_arg="xs", n_classes=4):
    """Deterministic PyTorch-style init: U(-1/sqrt(fan_in), 1/sqrt(fan_in))."""
    size_dict = {"xs": [384, 256, 256], "small": [768, 512, 256],
                 "big": [1024, 512, 384], "large": [2048, 1024, 512]}
    l0, l1, d = size_dict[size_arg]

    def linear(k, fan_in, fan_out):
        kw, kb = jax.random.split(k)
        bound = float(fan_in) ** -0.5
        w = jax.random.uniform(kw, (fan_in, fan_out), jnp.float32, -bound, bound)
        b = jax.random.uniform(kb, (1, fan_out), jnp.float32, -bound, bound)
        return w, b

    keys = jax.random.split(key, 5)
    w_fc, b_fc = linear(keys[0], l0, l1)           # fc Linear(L0, L1)
    w_a, b_a = linear(keys[1], l1, d)              # attention_a Linear(L1, D)
    w_b, b_b = linear(keys[2], l1, d)              # attention_b Linear(L1, D)
    w_c, b_c = linear(keys[3], d, 1)               # attention_c Linear(D, 1)
    w_cls, b_cls = linear(keys[4], l1, n_classes)  # classifiers Linear(L1, C)
    return dict(w_fc=w_fc, b_fc=b_fc, w_a=w_a, b_a=b_a, w_b=w_b, b_b=b_b,
                w_c=w_c, b_c=b_c, w_cls=w_cls, b_cls=b_cls), (l0, l1, d)


def chief_survival_ref(h, p):
    """Pure-JAX f32 reference mirroring the PyTorch forward."""
    h1 = jnp.maximum(h @ p["w_fc"] + p["b_fc"], 0.0)
    a = jnp.tanh(h1 @ p["w_a"] + p["b_a"])
    b = jax.nn.sigmoid(h1 @ p["w_b"] + p["b_b"])
    A = (a * b) @ p["w_c"] + p["b_c"]
    A = A.T
    A_raw = A
    A = jax.nn.softmax(A, axis=1)
    M = A @ h1
    logits = M @ p["w_cls"] + p["b_cls"]
    return {"bag_logits": logits, "attention_raw": A_raw, "M": M}


if __name__ == "__main__":
    key = jax.random.PRNGKey(0)
    k_param, k_h = jax.random.split(key)

    n_instances = 500          # not a multiple of the tile -> exercises masking
    n_classes = 4
    params, (l0, l1, d) = init_params(k_param, size_arg="xs",
                                      n_classes=n_classes)
    h = jax.random.normal(k_h, (n_instances, l0), jnp.float32)

    ref = chief_survival_ref(h, params)

    # Exact f32 path with a small forced tile: exercises multi-tile online
    # softmax rescaling + in-kernel ragged-tail masking.
    out_f32 = chief_survival_forward(h, params, use_bf16=False, tile_n=128)
    jax.block_until_ready(out_f32)
    for name in ("bag_logits", "attention_raw", "M"):
        assert jnp.allclose(out_f32[name], ref[name],
                            rtol=1e-4, atol=1e-4), f"f32:{name}"

    # Mixed-precision fast path (bf16 MXU inputs, f32 accumulation), auto tile.
    out_bf16 = chief_survival_forward(h, params, use_bf16=True)
    jax.block_until_ready(out_bf16)
    for name in ("bag_logits", "attention_raw", "M"):
        assert jnp.allclose(out_bf16[name], ref[name],
                            rtol=5e-2, atol=5e-2), f"bf16:{name}"

    assert out_f32["bag_logits"].shape == (1, n_classes)
    assert out_f32["attention_raw"].shape == (1, n_instances)
    assert out_f32["M"].shape == (1, l1)

    print("KERNEL_OK")
</pallas_src>

<mosaic_0001>
module attributes {stable_mosaic.version = 11 : i64} {
  func.func @_chief_kernel(%arg0: i32, %arg1: memref<128x384xf32, #tpu.memory_space<vmem>>, %arg2: memref<384x256xf32, #tpu.memory_space<vmem>>, %arg3: memref<1x256xf32, #tpu.memory_space<vmem>>, %arg4: memref<256x512xf32, #tpu.memory_space<vmem>>, %arg5: memref<1x512xf32, #tpu.memory_space<vmem>>, %arg6: memref<1x256xf32, #tpu.memory_space<vmem>>, %arg7: memref<1x1xf32, #tpu.memory_space<vmem>>, %arg8: memref<256x4xf32, #tpu.memory_space<vmem>>, %arg9: memref<1x4xf32, #tpu.memory_space<vmem>>, %arg10: memref<1x4xf32, #tpu.memory_space<vmem>>, %arg11: memref<1x128xf32, #tpu.memory_space<vmem>>, %arg12: memref<1x256xf32, #tpu.memory_space<vmem>>, %arg13: memref<1x256xf32, #tpu.memory_space<vmem>>, %arg14: memref<1x1xf32, #tpu.memory_space<vmem>>, %arg15: memref<1x1xf32, #tpu.memory_space<vmem>>) attributes {dimension_semantics = [#tpu.dimension_semantics<arbitrary>], iteration_bounds = array<i64: 4>, scalar_prefetch = 0 : i64, scratch_operands = 3 : i64, tpu.core_type = #tpu.core_type<tc>, window_params = [{transform_indices = @transform_0, window_bounds = array<i64: 128, 384>}, {pipeline_mode = #tpu.pipeline_mode<synchronous>, transform_indices = @transform_1, window_bounds = array<i64: 384, 256>}, {pipeline_mode = #tpu.pipeline_mode<synchronous>, transform_indices = @transform_2, window_bounds = array<i64: 1, 256>}, {pipeline_mode = #tpu.pipeline_mode<synchronous>, transform_indices = @transform_3, window_bounds = array<i64: 256, 512>}, {pipeline_mode = #tpu.pipeline_mode<synchronous>, transform_indices = @transform_4, window_bounds = array<i64: 1, 512>}, {pipeline_mode = #tpu.pipeline_mode<synchronous>, transform_indices = @transform_5, window_bounds = array<i64: 1, 256>}, {pipeline_mode = #tpu.pipeline_mode<synchronous>, transform_indices = @transform_6, window_bounds = array<i64: 1, 1>}, {pipeline_mode = #tpu.pipeline_mode<synchronous>, transform_indices = @transform_7, window_bounds = array<i64: 256, 4>}, {pipeline_mode = #tpu.pipeline_mode<synchronous>, transform_indices = @transform_8, window_bounds = array<i64: 1, 4>}, {pipeline_mode = #tpu.pipeline_mode<synchronous>, transform_indices = @transform_9, window_bounds = array<i64: 1, 4>}, {transform_indices = @transform_10, window_bounds = array<i64: 1, 128>}, {pipeline_mode = #tpu.pipeline_mode<synchronous>, transform_indices = @transform_11, window_bounds = array<i64: 1, 256>}]} {
    %c0_i32 = arith.constant 0 : i32
    %0 = arith.cmpi eq, %arg0, %c0_i32 : i32
    %1 = arith.extui %0 : i1 to i32
    %c0_i32_0 = arith.constant 0 : i32
    %2 = arith.cmpi ne, %1, %c0_i32_0 : i32
    scf.if %2 {
      %cst_41 = arith.constant 0.000000e+00 : f32
      %75 = vector.broadcast %cst_41 : f32 to vector<1x256xf32>
      %c0_42 = arith.constant 0 : index
      %c0_43 = arith.constant 0 : index
      %76 = vector.load %arg13[%c0_42, %c0_43] : memref<1x256xf32, #tpu.memory_space<vmem>>, vector<1x256xf32>
      tpu.vector_store %arg13[%c0_42, %c0_43], %75 {strides = array<i32>} : memref<1x256xf32, #tpu.memory_space<vmem>>, vector<1x256xf32>,
      %cst_44 = arith.constant 0.000000e+00 : f32
      %77 = vector.broadcast %cst_44 : f32 to vector<1x1xf32>
      %c0_45 = arith.constant 0 : index
      %c0_46 = arith.constant 0 : index
      %78 = vector.load %arg15[%c0_45, %c0_46] : memref<1x1xf32, #tpu.memory_space<vmem>>, vector<1x1xf32>
      tpu.vector_store %arg15[%c0_45, %c0_46], %77 {strides = array<i32>} : memref<1x1xf32, #tpu.memory_space<vmem>>, vector<1x1xf32>,
      %cst_47 = arith.constant -1.000000e+30 : f32
      %79 = vector.broadcast %cst_47 : f32 to vector<1x1xf32>
      %c0_48 = arith.constant 0 : index
      %c0_49 = arith.constant 0 : index
      %80 = vector.load %arg14[%c0_48, %c0_49] : memref<1x1xf32, #tpu.memory_space<vmem>>, vector<1x1xf32>
      tpu.vector_store %arg14[%c0_48, %c0_49], %79 {strides = array<i32>} : memref<1x1xf32, #tpu.memory_space<vmem>>, vector<1x1xf32>,
    } else {
    }
    %c0 = arith.constant 0 : index
    %c0_1 = arith.constant 0 : index
    %3 = vector.load %arg1[%c0, %c0_1] : memref<128x384xf32, #tpu.memory_space<vmem>>, vector<128x384xf32>
    %c0_2 = arith.constant 0 : index
    %c0_3 = arith.constant 0 : index
    %4 = vector.load %arg2[%c0_2, %c0_3] : memref<384x256xf32, #tpu.memory_space<vmem>>, vector<384x256xf32>
    %cst = arith.constant dense<0.000000e+00> : vector<128x256xf32>
    %5 = tpu.matmul %3, %4, %cst {dimension_numbers = #tpu.dot_dimension_numbers<[1], [0], [0], [1], [0, 0, 1, 1], [], []>} : vector<128x384xf32>, vector<384x256xf32>, vector<128x256xf32> -> vector<128x256xf32>
    %c0_4 = arith.constant 0 : index
    %c0_5 = arith.constant 0 : index
    %6 = vector.load %arg3[%c0_4, %c0_5] : memref<1x256xf32, #tpu.memory_space<vmem>>, vector<1x256xf32>
    %7 = vector.broadcast %6 : vector<1x256xf32> to vector<128x256xf32>
    %8 = arith.addf %5, %7 : vector<128x256xf32>
    %cst_6 = arith.constant 0.000000e+00 : f32
    %9 = vector.broadcast %cst_6 : f32 to vector<128x256xf32>
    %10 = arith.maximumf %8, %9 : vector<128x256xf32>
    %c128_i32 = arith.constant 128 : i32
    %11 = arith.muli %arg0, %c128_i32 : i32
    %12 = tpu.iota {dimensions = array<i32: 0>} : vector<128x1xi32>
    %13 = vector.broadcast %11 : i32 to vector<128x1xi32>
    %14 = arith.addi %13, %12 : vector<128x1xi32>
    %c500_i32 = arith.constant 500 : i32
    %15 = vector.broadcast %c500_i32 : i32 to vector<128x1xi32>
    %16 = arith.cmpi slt, %14, %15 : vector<128x1xi32>
    %cst_7 = arith.constant 0.000000e+00 : f32
    %17 = vector.shape_cast %16 : vector<128x1xi1> to vector<128x1xi1>
    %18 = vector.broadcast %17 : vector<128x1xi1> to vector<128x256xi1>
    %19 = vector.broadcast %cst_7 : f32 to vector<128x256xf32>
    %20 = arith.select %18, %10, %19 : vector<128x256xi1>, vector<128x256xf32>
    %c0_8 = arith.constant 0 : index
    %c0_9 = arith.constant 0 : index
    %21 = vector.load %arg4[%c0_8, %c0_9] : memref<256x512xf32, #tpu.memory_space<vmem>>, vector<256x512xf32>
    %cst_10 = arith.constant dense<0.000000e+00> : vector<128x512xf32>
    %22 = tpu.matmul %20, %21, %cst_10 {dimension_numbers = #tpu.dot_dimension_numbers<[1], [0], [0], [1], [0, 0, 1, 1], [], []>} : vector<128x256xf32>, vector<256x512xf32>, vector<128x512xf32> -> vector<128x512xf32>
    %c0_11 = arith.constant 0 : index
    %c0_12 = arith.constant 0 : index
    %23 = vector.load %arg5[%c0_11, %c0_12] : memref<1x512xf32, #tpu.memory_space<vmem>>, vector<1x512xf32>
    %24 = vector.broadcast %23 : vector<1x512xf32> to vector<128x512xf32>
    %25 = arith.addf %22, %24 : vector<128x512xf32>
    %26 = vector.extract_strided_slice %25 {offsets = [0, 0], sizes = [128, 256], strides = [1, 1]} : vector<128x512xf32> to vector<128x256xf32>
    %27 = math.tanh %26 : vector<128x256xf32>
    %28 = vector.extract_strided_slice %25 {offsets = [0, 256], sizes = [128, 256], strides = [1, 1]} : vector<128x512xf32> to vector<128x256xf32>
    %cst_13 = arith.constant 5.000000e-01 : f32
    %29 = vector.broadcast %cst_13 : f32 to vector<128x256xf32>
    %30 = arith.mulf %29, %28 : vector<128x256xf32>
    %31 = math.tanh %30 : vector<128x256xf32>
    %cst_14 = arith.constant 5.000000e-01 : f32
    %32 = vector.broadcast %cst_14 : f32 to vector<128x256xf32>
    %33 = arith.mulf %32, %31 : vector<128x256xf32>
    %cst_15 = arith.constant 5.000000e-01 : f32
    %34 = vector.broadcast %cst_15 : f32 to vector<128x256xf32>
    %35 = arith.addf %33, %34 : vector<128x256xf32>
    %36 = arith.mulf %27, %35 : vector<128x256xf32>
    %c0_16 = arith.constant 0 : index
    %c0_17 = arith.constant 0 : index
    %37 = vector.load %arg6[%c0_16, %c0_17] : memref<1x256xf32, #tpu.memory_space<vmem>>, vector<1x256xf32>
    %cst_18 = arith.constant dense<0.000000e+00> : vector<1x128xf32>
    %38 = tpu.matmul %37, %36, %cst_18 {dimension_numbers = #tpu.dot_dimension_numbers<[1], [1], [0], [0], [0, 0, 1, 0], [], []>} : vector<1x256xf32>, vector<128x256xf32>, vector<1x128xf32> -> vector<1x128xf32>
    %c0_19 = arith.constant 0 : index
    %c0_20 = arith.constant 0 : index
    %39 = vector.load %arg7[%c0_19, %c0_20] : memref<1x1xf32, #tpu.memory_space<vmem>>, vector<1x1xf32>
    %40 = vector.broadcast %39 : vector<1x1xf32> to vector<1x128xf32>
    %41 = arith.addf %38, %40 : vector<1x128xf32>
    %c0_21 = arith.constant 0 : index
    %c0_22 = arith.constant 0 : index
    %42 = vector.load %arg11[%c0_21, %c0_22] : memref<1x128xf32, #tpu.memory_space<vmem>>, vector<1x128xf32>
    tpu.vector_store %arg11[%c0_21, %c0_22], %41 {strides = array<i32>} : memref<1x128xf32, #tpu.memory_space<vmem>>, vector<1x128xf32>,
    %43 = tpu.iota {dimensions = array<i32: 1>} : vector<1x128xi32>
    %44 = vector.broadcast %11 : i32 to vector<1x128xi32>
    %45 = arith.addi %44, %43 : vector<1x128xi32>
    %c500_i32_23 = arith.constant 500 : i32
    %46 = vector.broadcast %c500_i32_23 : i32 to vector<1x128xi32>
    %47 = arith.cmpi slt, %45, %46 : vector<1x128xi32>
    %cst_24 = arith.constant -1.000000e+30 : f32
    %48 = vector.broadcast %cst_24 : f32 to vector<1x128xf32>
    %49 = arith.select %47, %41, %48 : vector<1x128xi1>, vector<1x128xf32>
    %c0_25 = arith.constant 0 : index
    %c0_26 = arith.constant 0 : index
    %50 = vector.load %arg14[%c0_25, %c0_26] : memref<1x1xf32, #tpu.memory_space<vmem>>, vector<1x1xf32>
    %cst_27 = arith.constant dense<0xFF800000> : vector<1xf32>
    %51 = vector.multi_reduction <maximumf>, %49, %cst_27 [1] : vector<1x128xf32> to vector<1xf32>
    %52 = vector.shape_cast %51 : vector<1xf32> to vector<1x1xf32>
    %53 = arith.maximumf %50, %52 : vector<1x1xf32>
    %54 = arith.subf %50, %53 : vector<1x1xf32>
    %55 = math.exp %54 : vector<1x1xf32>
    %56 = vector.broadcast %53 : vector<1x1xf32> to vector<1x128xf32>
    %57 = arith.subf %49, %56 : vector<1x128xf32>
    %58 = math.exp %57 : vector<1x128xf32>
    %c0_28 = arith.constant 0 : index
    %c0_29 = arith.constant 0 : index
    %59 = vector.load %arg15[%c0_28, %c0_29] : memref<1x1xf32, #tpu.memory_space<vmem>>, vector<1x1xf32>
    %60 = arith.mulf %55, %59 : vector<1x1xf32>
    %cst_30 = arith.constant dense<0.000000e+00> : vector<1xf32>
    %61 = vector.multi_reduction <add>, %58, %cst_30 [1] : vector<1x128xf32> to vector<1xf32>
    %62 = vector.shape_cast %61 : vector<1xf32> to vector<1x1xf32>
    %63 = arith.addf %60, %62 : vector<1x1xf32>
    %c0_31 = arith.constant 0 : index
    %c0_32 = arith.constant 0 : index
    %64 = vector.load %arg15[%c0_31, %c0_32] : memref<1x1xf32, #tpu.memory_space<vmem>>, vector<1x1xf32>
    tpu.vector_store %arg15[%c0_31, %c0_32], %63 {strides = array<i32>} : memref<1x1xf32, #tpu.memory_space<vmem>>, vector<1x1xf32>,
    %c0_33 = arith.constant 0 : index
    %c0_34 = arith.constant 0 : index
    %65 = vector.load %arg13[%c0_33, %c0_34] : memref<1x256xf32, #tpu.memory_space<vmem>>, vector<1x256xf32>
    %66 = vector.broadcast %55 : vector<1x1xf32> to vector<1x256xf32>
    %67 = arith.mulf %66, %65 : vector<1x256xf32>
    %cst_35 = arith.constant dense<0.000000e+00> : vector<1x256xf32>
    %68 = tpu.matmul %58, %20, %cst_35 {dimension_numbers = #tpu.dot_dimension_numbers<[1], [0], [0], [1], [0, 0, 1, 1], [], []>} : vector<1x128xf32>, vector<128x256xf32>, vector<1x256xf32> -> vector<1x256xf32>
    %69 = arith.addf %67, %68 : vector<1x256xf32>
    %c0_36 = arith.constant 0 : index
    %c0_37 = arith.constant 0 : index
    %70 = vector.load %arg13[%c0_36, %c0_37] : memref<1x256xf32, #tpu.memory_space<vmem>>, vector<1x256xf32>
    tpu.vector_store %arg13[%c0_36, %c0_37], %69 {strides = array<i32>} : memref<1x256xf32, #tpu.memory_space<vmem>>, vector<1x256xf32>,
    %c0_38 = arith.constant 0 : index
    %c0_39 = arith.constant 0 : index
    %71 = vector.load %arg14[%c0_38, %c0_39] : memref<1x1xf32, #tpu.memory_space<vmem>>, vector<1x1xf32>
    tpu.vector_store %arg14[%c0_38, %c0_39], %53 {strides = array<i32>} : memref<1x1xf32, #tpu.memory_space<vmem>>, vector<1x1xf32>,
    %c3_i32 = arith.constant 3 : i32
    %72 = arith.cmpi eq, %arg0, %c3_i32 : i32
    %73 = arith.extui %72 : i1 to i32
    %c0_i32_40 = arith.constant 0 : i32
    %74 = arith.cmpi ne, %73, %c0_i32_40 : i32
    scf.if %74 {
      %c0_41 = arith.constant 0 : index
      %c0_42 = arith.constant 0 : index
      %75 = vector.load %arg13[%c0_41, %c0_42] : memref<1x256xf32, #tpu.memory_space<vmem>>, vector<1x256xf32>
      %c0_43 = arith.constant 0 : index
      %c0_44 = arith.constant 0 : index
      %76 = vector.load %arg15[%c0_43, %c0_44] : memref<1x1xf32, #tpu.memory_space<vmem>>, vector<1x1xf32>
      %77 = vector.broadcast %76 : vector<1x1xf32> to vector<1x256xf32>
      %78 = arith.divf %75, %77 : vector<1x256xf32>
      %c0_45 = arith.constant 0 : index
      %c0_46 = arith.constant 0 : index
      %79 = vector.load %arg12[%c0_45, %c0_46] : memref<1x256xf32, #tpu.memory_space<vmem>>, vector<1x256xf32>
      tpu.vector_store %arg12[%c0_45, %c0_46], %78 {strides = array<i32>} : memref<1x256xf32, #tpu.memory_space<vmem>>, vector<1x256xf32>,
      %c0_47 = arith.constant 0 : index
      %c0_48 = arith.constant 0 : index
      %80 = vector.load %arg8[%c0_47, %c0_48] : memref<256x4xf32, #tpu.memory_space<vmem>>, vector<256x4xf32>
      %cst_49 = arith.constant dense<0.000000e+00> : vector<1x4xf32>
      %81 = tpu.matmul %78, %80, %cst_49 {dimension_numbers = #tpu.dot_dimension_numbers<[1], [0], [0], [1], [0, 0, 1, 1], [], []>} : vector<1x256xf32>, vector<256x4xf32>, vector<1x4xf32> -> vector<1x4xf32>
      %c0_50 = arith.constant 0 : index
      %c0_51 = arith.constant 0 : index
      %82 = vector.load %arg9[%c0_50, %c0_51] : memref<1x4xf32, #tpu.memory_space<vmem>>, vector<1x4xf32>
      %83 = arith.addf %81, %82 : vector<1x4xf32>
      %c0_52 = arith.constant 0 : index
      %c0_53 = arith.constant 0 : index
      %84 = vector.load %arg10[%c0_52, %c0_53] : memref<1x4xf32, #tpu.memory_space<vmem>>, vector<1x4xf32>
      tpu.vector_store %arg10[%c0_52, %c0_53], %83 {strides = array<i32>} : memref<1x4xf32, #tpu.memory_space<vmem>>, vector<1x4xf32>,
    } else {
    }
    return
  }
  func.func @transform_0(%arg0: i32) -> (i32, i32) {
    %c0_i32 = arith.constant 0 : i32
    %c0_i32_0 = arith.constant 0 : i32
    return %arg0, %c0_i32 : i32, i32
  }
  func.func @transform_1(%arg0: i32) -> (i32, i32) {
    %c0_i32 = arith.constant 0 : i32
    %c0_i32_0 = arith.constant 0 : i32
    %c0_i32_1 = arith.constant 0 : i32
    return %c0_i32, %c0_i32_0 : i32, i32
  }
  func.func @transform_2(%arg0: i32) -> (i32, i32) {
    %c0_i32 = arith.constant 0 : i32
    %c0_i32_0 = arith.constant 0 : i32
    %c0_i32_1 = arith.constant 0 : i32
    return %c0_i32, %c0_i32_0 : i32, i32
  }
  func.func @transform_3(%arg0: i32) -> (i32, i32) {
    %c0_i32 = arith.constant 0 : i32
    %c0_i32_0 = arith.constant 0 : i32
    %c0_i32_1 = arith.constant 0 : i32
    return %c0_i32, %c0_i32_0 : i32, i32
  }
  func.func @transform_4(%arg0: i32) -> (i32, i32) {
    %c0_i32 = arith.constant 0 : i32
    %c0_i32_0 = arith.constant 0 : i32
    %c0_i32_1 = arith.constant 0 : i32
    return %c0_i32, %c0_i32_0 : i32, i32
  }
  func.func @transform_5(%arg0: i32) -> (i32, i32) {
    %c0_i32 = arith.constant 0 : i32
    %c0_i32_0 = arith.constant 0 : i32
    %c0_i32_1 = arith.constant 0 : i32
    return %c0_i32, %c0_i32_0 : i32, i32
  }
  func.func @transform_6(%arg0: i32) -> (i32, i32) {
    %c0_i32 = arith.constant 0 : i32
    %c0_i32_0 = arith.constant 0 : i32
    %c0_i32_1 = arith.constant 0 : i32
    return %c0_i32, %c0_i32_0 : i32, i32
  }
  func.func @transform_7(%arg0: i32) -> (i32, i32) {
    %c0_i32 = arith.constant 0 : i32
    %c0_i32_0 = arith.constant 0 : i32
    %c0_i32_1 = arith.constant 0 : i32
    return %c0_i32, %c0_i32_0 : i32, i32
  }
  func.func @transform_8(%arg0: i32) -> (i32, i32) {
    %c0_i32 = arith.constant 0 : i32
    %c0_i32_0 = arith.constant 0 : i32
    %c0_i32_1 = arith.constant 0 : i32
    return %c0_i32, %c0_i32_0 : i32, i32
  }
  func.func @transform_9(%arg0: i32) -> (i32, i32) {
    %c0_i32 = arith.constant 0 : i32
    %c0_i32_0 = arith.constant 0 : i32
    %c0_i32_1 = arith.constant 0 : i32
    return %c0_i32, %c0_i32_0 : i32, i32
  }
  func.func @transform_10(%arg0: i32) -> (i32, i32) {
    %c0_i32 = arith.constant 0 : i32
    %c0_i32_0 = arith.constant 0 : i32
    return %c0_i32, %arg0 : i32, i32
  }
  func.func @transform_11(%arg0: i32) -> (i32, i32) {
    %c0_i32 = arith.constant 0 : i32
    %c0_i32_0 = arith.constant 0 : i32
    %c0_i32_1 = arith.constant 0 : i32
    return %c0_i32, %c0_i32_0 : i32, i32
  }
}

</mosaic_0001>

<bundles_post_ra>
// kernel: tpu_custom_call.1
= control target key start
LH: loop header
LB: loop body
LE: loop exit
PB: predicated region body
PF: predicated region fallthrough
CT: control target
= control target key end

     0   :  { %s4523_s0 = inlined_call_operand.hbm [shape: f32[500,384], index: 0, kind: input, shape index: {}]   ;;  %s4524_s1 = inlined_call_operand.hbm [shape: f32[384,256], index: 1, kind: input, shape index: {}]   ;;  %s4525_s2 = inlined_call_operand.vmem [shape: f32[1,256], index: 2, kind: input, shape index: {}]   ;;  %s4526_s3 = inlined_call_operand.hbm [shape: f32[256,512], index: 3, kind: input, shape index: {}]   ;;  %s4527_s4 = inlined_call_operand.vmem [shape: f32[1,512], index: 4, kind: input, shape index: {}]   ;;  %s4528_s5 = inlined_call_operand.vmem [shape: f32[1,256], index: 5, kind: input, shape index: {}]   ;;  %s4529_s6 = inlined_call_operand.<no memory space> [shape: f32[1,1], index: 6, kind: input, shape index: {}]   ;;  %s4530_s7 = inlined_call_operand.vmem [shape: f32[256,4], index: 7, kind: input, shape index: {}]   ;;  %s4531_s8 = inlined_call_operand.vmem [shape: f32[1,4], index: 8, kind: input, shape index: {}]   ;;  %s4532_s9 = inlined_call_operand.hbm [shape: f32[1,4], index: 9, kind: output, shape index: {0}]   ;;  %s4533_s10 = inlined_call_operand.hbm [shape: f32[1,512], index: 10, kind: output, shape index: {1}]   ;;  %s4534_s11 = inlined_call_operand.hbm [shape: f32[1,256], index: 11, kind: output, shape index: {2}]  }
   0x1   :  { %4563 = sst [smem:[#allocation29_spill]] %s4532_s9  ;;  %v17_v0 = vstv %s4529_s6 }
   0x2   :  { %4564 = sst [smem:[#allocation30_spill]] %s4534_s11  ;;  %18 = vst [vmem:[#allocation5] sm:$0x1] %v17_v0 }
   0x3   :  { %19 = vsyncpa [#allocation7], 0 }
   0x4   :  { %21 = vsyncpa [#allocation7 + $0x1], 0 }
   0x5   :  { %22 = vsyncpa [#allocation10], 0 }
   0x6   :  { %23 = vsyncpa [#allocation8], 0 }
   0x7   :  { %24 = vsyncpa [#allocation14], 0 }
   0x8   :  { %26 = vsyncpa [#allocation14 + $0x1], 0  ;;  %s3337_s19 = smov 0   ;;  %s3339_s20 = smov 0  }
   0x9   :  { %s3341_s21 = smov 0   ;;  %s3343_s22 = smov 0  }
   0xa LB: > { %s3356_s6 = sadd.s32 4294967295, %s3254_s22   ;;  %s4535_s23 = sadd.s32 4294967294, %s3254_s22   ;;  %s3254_s22 = sphi %s3343_s22, %s4635_s22   ;;  %s3250_s21 = sphi %s3341_s21, %s4639_s21   ;;  %s3246_s20 = sphi %s3339_s20, %s4638_s20   ;;  %s3242_s19 = sphi %s3337_s19, %s4637_s19  }
   0xb   : > { %s3360_s24 = sadd.s32 1, %s3254_s22   ;;  %s39_s25 = sadd.s32 1, %s3250_s21 }
   0xc   : > { %4565 = sst [smem:[#allocation21_spill]] %s3360_s24  ;;  %s36_s26 = ssub.s32 %s3254_s22, %s3360_s24 }
   0xd   : > { %p46_p0 = scmp.ne.s32.totalorder %s3250_s21, %s3246_s20  ;;  %p37_p1 = scmp.eq.s32.totalorder %s36_s26, 0 }
   0xe   : > { %p47_p2 = scmp.eq.s32.totalorder %s3254_s22, 0  ;;  %p52_p3 = scmp.ne.s32.totalorder %s3246_s20, %s3242_s19 }
   0xf   : > { %p4539_p4 = scmp.eq.s32.totalorder %s3356_s6, 0  ;;  %p4538_p7 = scmp.eq.s32.totalorder %s3356_s6, 3 }
  0x10   : > { %s3371_s27 = scalar_select %p37_p1, %s3250_s21, %s39_s25  }
  0x11   : > { %p3373_p5 = por %p47_p2, %p46_p0  ;;  %p3379_p6 = por %p4539_p4, %p52_p3 }
  0x12   : > { %4566 = sst [smem:[#allocation22_spill]] %s3371_s27  ;;  %p271_p8 = scmp.eq.s32.totalorder %s4535_s23, 3 }
  0x13   : > { %s4567_s28 = scalar_select %p3373_p5, 1, 0 }
  0x14   : > { %s4568_s29 = scalar_select %p3379_p6, 1, 0 }
  0x15   : > { %p2258_p9 = scmp.ge.s32.totalorder %s3254_s22, 1  ;;  %p299_p10 = scmp.lt.s32.totalorder %s3254_s22, 5 }
  0x16   : > { %p3390_p11 = por %p4538_p7, %p46_p0  ;;  %p3394_p12 = por %p271_p8, %p52_p3 }
  0x17   : > { %p3398_p13 = pnand %p2258_p9, %p299_p10  ;;  %s3256_s14 = smov [#allocation9]  }
  0x18   : > { %s4569_s30 = scalar_select %p3390_p11, 1, 0 }
  0x19   : > { %s4570_s12 = scalar_select %p3394_p12, 1, 0 }
  0x1a   : > { %s4572_s13 = scalar_select %p3398_p13, 1, 0 }
  0x1b   : > { %4571 = sst [smem:[#allocation23_spill]] %s4570_s12  ;;  %p2835_p2 = pneg %p3398_p13 }
  0x1c   : > { %s311_s15 = sshll.u32 %s3256_s14, 4  ;;  %s3257_s17 = smov [#allocation11]   ;;  %s312_s15 = int_to_ptr.vmem [resolvable:$true] %s311_s15 }
  0x1d   : > { %p3407_p0 = pnand %p2835_p2, %p4539_p4  ;;  %s327_s18 = sshll.u32 %s3257_s17, 4  ;;  %s3411_s18 = int_to_ptr.vmem [resolvable:$true] %s327_s18 }
  0x1e   : > { %s3040_s26 = scalar_lea.hbm %s4524_s1, 12288 }
  0x1f   : > { %p3041_p3 = scmp.ne.s32.totalorder %s4524_s1, %s3040_s26  ;;  %p3042_p8 = pneg %p3407_p0 }
  0x20   : > { %p3047_p2 = scmp.lt.u32.totalorder %s3040_s26, %s4524_s1 }
  0x21   : > { %p3043_p9 = pnand %p3042_p8, %p3041_p3 }
  0x23   : > { %p3044_p10 = pneg %p3043_p9 }
  0x25   : > { %p3049_p7 = pnand %p3047_p2, %p3044_p10 }
  0x27   : > { %3052 = shalt.err (!%p3049_p7)
}
  0x28   : > { %s3053_s17 = scalar_lea.vmem %s312_s15, 12288  ;;  %p3061_p11 = scmp.lt.s32.totalorder %s312_s15, %s312_s15 }
  0x29   : > { %p3054_p1 = scmp.ne.s32.totalorder %s312_s15, %s3053_s17  ;;  %p3062_p6 = scmp.lt.s32.totalorder %s3053_s17, %s3053_s17 }
  0x2b   : > { %p3056_p4 = pnand %p3054_p1, %p3042_p8  ;;  %p3063_p13 = por %p3062_p6, %p3061_p11 }
  0x2d   : > { %p3057_p12 = pneg %p3056_p4 }
  0x2f   : > { %p3064_p5 = pnand %p3063_p13, %p3057_p12 }
  0x31   : > { %3067 = shalt.err (!%p3064_p5)
}
  0x32   : > { %s3258_s23 = smov 256   ;;  %s3259_s27 = smov 16  }
  0x33   : > { %2838 = dma.hbm_to_vmem [thread:$0]  (!%p3407_p0), %s4524_s1, 12288, %s312_s15, [#allocation10], %s3258_s23, %s3258_s23, %s3259_s27  }
  0x34   : > { %s3068_s14 = scalar_lea.hbm %s4526_s3, 16384 }
  0x35   : > { %p3069_p4 = scmp.ne.s32.totalorder %s4526_s3, %s3068_s14  ;;  %p3075_p7 = scmp.lt.u32.totalorder %s3068_s14, %s4526_s3 }
  0x37   : > { %p3071_p5 = pnand %p3069_p4, %p3042_p8 }
  0x39   : > { %p3072_p6 = pneg %p3071_p5 }
  0x3b   : > { %p3077_p11 = pnand %p3075_p7, %p3072_p6 }
  0x3d   : > { %3080 = shalt.err (!%p3077_p11)
}
  0x3e   : > { %s3081_s15 = scalar_lea.vmem %s3411_s18, 16384  ;;  %p3089_p3 = scmp.lt.s32.totalorder %s3411_s18, %s3411_s18 }
  0x3f   : > { %p3082_p12 = scmp.ne.s32.totalorder %s3411_s18, %s3081_s15  ;;  %p3090_p9 = scmp.lt.s32.totalorder %s3081_s15, %s3081_s15 }
  0x41   : > { %p3084_p13 = pnand %p3082_p12, %p3042_p8  ;;  %p3091_p10 = por %p3090_p9, %p3089_p3 }
  0x43   : > { %p3085_p1 = pneg %p3084_p13 }
  0x45   : > { %p3092_p2 = pnand %p3091_p10, %p3085_p1 }
  0x47   : > { %3095 = shalt.err (!%p3092_p2)
}
  0x48   : > { %s3260_s9 = smov 512   ;;  %s3261_s11 = smov 32  }
  0x49   : > { %2841 = dma.hbm_to_vmem [thread:$0]  (!%p3407_p0), %s4526_s3, 16384, %s3411_s18, [#allocation10], %s3260_s9, %s3260_s9, %s3261_s11  }
  0x4a   : > { %p2261_p4 = scmp.ge.s32.totalorder %s3254_s22, 4 }
  0x4b   : > { %p4574_p8 = scmp.ne.s32.totalorder (!%p2261_p4), %s4567_s28, 0 }
  0x4c   : > { %352 = sbr.rel (%p2261_p4) target bundleno = 119 (0x77), region = 48 }
  0x53   : > { %355 = sbr.rel (!%p4574_p8) target bundleno = 119 (0x77), region = 52  ;;  %s356_s27 = sand.u32 (%p4574_p8), 1, %s3250_s21  }
  0x54   : > { %s2262_s24 = sshll.u32 (%p4574_p8), %s3254_s22, 4  ;;  %s2813_s19 = smul.u32 (%p4574_p8), 384, %s356_s27 }
  0x55   : > { %s362_s25 = ssub.s32 (%p4574_p8), 63, %s2262_s24  ;;  %s3468_s14 = scalar_lea.sflag (%p4574_p8), [#allocation7], %s356_s27 }
  0x56   : > { %p363_p5 = scmp.lt.s32.totalorder (%p4574_p8), %s362_s25, 16  ;;  %s360_s18 = scalar_lea.vmem (%p4574_p8), [#allocation6], %s2813_s19 }
  0x5a   : > { %s4641_s25 = smov (!%p363_p5, %s362_s25), 16 }
  0x5b   : > { %s3465_s26 = smul.u32 384, %s4641_s25 }
  0x5d   : > { %s368_s16 = ssub.s32 6144, %s3465_s26 }
  0x5e   : > { %369 = vsyncadd %s3468_s14, %s368_s16  ;;  %p2265_p0 = scmp.ne.s32.totalorder %s3465_s26, 0  ;;  %s2814_s28 = smul.u32 6144, %s3254_s22 }
  0x5f   : > { %s375_s17 = sshll.u32 %s360_s18, 4  ;;  %s3100_s24 = scalar_lea.hbm %s4523_s0, 24192  ;;  %s3478_s17 = int_to_ptr.vmem [resolvable:$true] %s375_s17 }
  0x60   : > { %s3476_s11 = scalar_lea.hbm %s4523_s0, %s2814_s28 }
  0x61   : > { %s3096_s12 = scalar_lea.hbm %s3476_s11, %s3465_s26  ;;  %p3101_p12 = scmp.lt.u32.totalorder %s3476_s11, %s4523_s0 }
  0x62   : > { %p3097_p6 = scmp.ne.s32.totalorder %s3476_s11, %s3096_s12  ;;  %p3102_p13 = scmp.lt.u32.totalorder %s3100_s24, %s3096_s12 }
  0x63   : > { %p3104_p3 = scmp.lt.u32.totalorder %s3096_s12, %s3476_s11 }
  0x64   : > { %p3098_p7 = pnand %p3097_p6, %p2265_p0  ;;  %p3103_p1 = por %p3102_p13, %p3101_p12 }
  0x66   : > { %p3099_p11 = pneg %p3098_p7  ;;  %p3105_p9 = por %p3104_p3, %p3103_p1 }
  0x68   : > { %p3106_p10 = pnand %p3105_p9, %p3099_p11 }
  0x6a   : > { %3109 = shalt.err (!%p3106_p10)
}
  0x6b   : > { %s3110_s16 = scalar_lea.vmem %s3478_s17, %s3465_s26  ;;  %s3262_s18 = smov [#allocation6]  }
  0x6c   : > { %p3111_p2 = scmp.ne.s32.totalorder %s3478_s17, %s3110_s16  ;;  %s3114_s28 = sshll.u32 %s3262_s18, 4  ;;  %s3115_s28 = int_to_ptr.vmem [resolvable:$false] %s3114_s28 }
  0x6d   : > { %s3116_s15 = scalar_lea.vmem %s3115_s28, 12288  ;;  %p3117_p5 = scmp.lt.s32.totalorder %s3478_s17, %s3115_s28 }
  0x6e   : > { %p3112_p4 = pnand %p3111_p2, %p2265_p0  ;;  %p3118_p6 = scmp.lt.s32.totalorder %s3116_s15, %s3110_s16 }
  0x70   : > { %p3113_p8 = pneg %p3112_p4  ;;  %p3119_p7 = por %p3118_p6, %p3117_p5 }
  0x72   : > { %p3120_p12 = pnand %p3119_p7, %p3113_p8 }
  0x74   : > { %3123 = shalt.err (!%p3120_p12)
}
  0x75   : > { %s3263_s9 = smov 384   ;;  %s3264_s12 = smov 24  }
  0x76   : > { %381 = dma.hbm_to_vmem [thread:$0]  (%p2265_p0), %s3476_s11, %s3465_s26, %s3478_s17, %s3468_s14, %s3263_s9, %s3263_s9, %s3264_s12  }
  0x77 PF: > { %p4575_p11 = scmp.ne.s32.totalorder %s4572_s13, 0 }
  0x79   : > { %387 = sbr.rel (%p4575_p11) target bundleno = 1976 (0x7b8), region = 56 }
  0x80   : > { %s3508_s23 = sand.u32 1, %s3246_s20   ;;  %p4576_p13 = scmp.ne.s32.totalorder %s4568_s29, 0 }
  0x81   : > { %s2815_s27 = smul.u32 384, %s3508_s23  ;;  %s390_s24 = scalar_lea.sflag [#allocation7], %s3508_s23 }
  0x83   : > { %s3512_s19 = scalar_lea.vmem [#allocation6], %s2815_s27 }
  0x84   : > { %3221 = dma.done.wait (%p4576_p13), %s390_s24, 6144  }
  0x85   : > { %3223 = vsyncadd (%p4576_p13), %s390_s24, 4294961152  ;;  %p4577_p0 = scmp.eq.s32.totalorder %s3356_s6, 0 }
  0x87   : > { %3225 = dma.done.wait (%p4577_p0), [#allocation10], 28672   ;;  %p4578_p1 = pmov %p4577_p0 }
  0x88   : > { %s436_s13 = scalar_lea.vmem [#allocation13], %s3508_s23  ;;  %p4579_p3 = scmp.ne.s32.totalorder %s3356_s6, 0 }
  0x89   : > { %3227 = vsyncadd (%p4578_p1), [#allocation10], 4294938624  ;;  %v449_v1 = vlaneseq (!%p4579_p3)  ;;  %vm454_vm0 = vcmask (!%p4579_p3), 0   ;;  %v3265_v2 = vmov (!%p4579_p3), 0.0   ;;  %v3266_v3 = vmov (!%p4579_p3), -1e+30  }
  0x8a   : > { %448 = sbr.rel (%p4579_p3) target bundleno = 145 (0x91), region = 72  ;;  %455 = vst.msk [vmem:[#allocation4] sm:$0x1] (!%p4579_p3), %vm454_vm0, %v3265_v2  ;;  %456 = vst.msk [vmem:[#allocation3] sm:$0x1] (!%p4579_p3), %vm454_vm0, %v3266_v3 }
  0x8b   : > { %vm451_vm1 = vcmp.lt.s32.totalorder (!%p4579_p3), %v449_v1, 256 }
  0x8c   : > { %453 = vst.msk [vmem:[#allocation2] sm:$0x3] (!%p4579_p3), %vm451_vm1, %v3265_v2 }
  0x91 PF: > { %v506_v4 = vld [vmem:[#allocation9 + $0x8] sm:$0xff]  ;;  %v508_v5 = vld [vmem:[#allocation9 + $0x18] sm:$0xff]  ;;  %v505_v6 = vld [vmem:[#allocation9] sm:$0xff]  ;;  %s2273_s29 = sshll.u32 %s3356_s6, 7  ;;  %p2370_p9 = scmp.ne.s32.totalorder %s3356_s6, 3 }
  0x92   : > { %v2413_v7 = vpack.c.bf16 %v508_v5, %v506_v4  ;;  %v507_v8 = vld [vmem:[#allocation9 + $0x10] sm:$0xff]  ;;  %v510_v9 = vld [vmem:[#allocation9 + $0x28] sm:$0xff]  ;;  %v512_v10 = vld [vmem:[#allocation9 + $0x38] sm:$0xff] }
  0x93   : > { %v2415_v11 = vpack.c.bf16 %v507_v8, %v505_v6  ;;  %v2417_v12 = vpack.c.bf16 %v512_v10, %v510_v9  ;;  %v509_v13 = vld [vmem:[#allocation9 + $0x20] sm:$0xff]  ;;  %v511_v14 = vld [vmem:[#allocation9 + $0x30] sm:$0xff]  ;;  %v514_v15 = vld [vmem:[#allocation9 + $0x48] sm:$0xff] }
  0x94   : > { %2414 = vmatprep.subr.bf16.mxu0 %v2413_v7  ;;  %v516_v16 = vld [vmem:[#allocation9 + $0x58] sm:$0xff]  ;;  %v2419_v17 = vpack.c.bf16 %v511_v14, %v509_v13  ;;  %v513_v19 = vld [vmem:[#allocation9 + $0x40] sm:$0xff]  ;;  %v515_v20 = vld [vmem:[#allocation9 + $0x50] sm:$0xff] }
  0x95   : > { %2416 = vmatpush1.bf16.msra.mxu0 %v2415_v11  ;;  %v2421_v18 = vpack.c.bf16 %v516_v16, %v514_v15  ;;  %v518_v21 = vld [vmem:[#allocation9 + $0x68] sm:$0xff]  ;;  %v520_v22 = vld [vmem:[#allocation9 + $0x78] sm:$0xff]  ;;  %v2423_v23 = vpack.c.bf16 %v515_v20, %v513_v19  ;;  %v517_v25 = vld [vmem:[#allocation9 + $0x60] sm:$0xff] }
  0x96   : > { %2418 = vmatprep.subr.bf16.mxu0 %v2417_v12  ;;  %v2425_v24 = vpack.c.bf16 %v520_v22, %v518_v21  ;;  %v519_v26 = vld [vmem:[#allocation9 + $0x70] sm:$0xff]  ;;  %v522_v27 = vld [vmem:[#allocation9 + $0x88] sm:$0xff]  ;;  %v524_v28 = vld [vmem:[#allocation9 + $0x98] sm:$0xff] }
  0x97   : > { %v2427_v29 = vpack.c.bf16 %v519_v26, %v517_v25  ;;  %v2429_v30 = vpack.c.bf16 %v524_v28, %v522_v27  ;;  %v521_v31 = vld [vmem:[#allocation9 + $0x80] sm:$0xff]  ;;  %v523_v32 = vld [vmem:[#allocation9 + $0x90] sm:$0xff]  ;;  %v526_v33 = vld [vmem:[#allocation9 + $0xa8] sm:$0xff] }
  0x98   : > { %v528_v34 = vld [vmem:[#allocation9 + $0xb8] sm:$0xff]  ;;  %v2431_v35 = vpack.c.bf16 %v523_v32, %v521_v31  ;;  %v525_v37 = vld [vmem:[#allocation9 + $0xa0] sm:$0xff]  ;;  %v527_v38 = vld [vmem:[#allocation9 + $0xb0] sm:$0xff] }
  0x99   : > { %2420 = vmatpush1.bf16.msra.mxu0 %v2419_v17  ;;  %v2433_v36 = vpack.c.bf16 %v528_v34, %v526_v33  ;;  %v530_v39 = vld [vmem:[#allocation9 + $0xc8] sm:$0xff]  ;;  %v532_v40 = vld [vmem:[#allocation9 + $0xd8] sm:$0xff]  ;;  %v2435_v41 = vpack.c.bf16 %v527_v38, %v525_v37  ;;  %v529_v43 = vld [vmem:[#allocation9 + $0xc0] sm:$0xff] }
  0x9a   : > { %2422 = vmatprep.subr.bf16.mxu0 %v2421_v18  ;;  %v2437_v42 = vpack.c.bf16 %v532_v40, %v530_v39  ;;  %v531_v44 = vld [vmem:[#allocation9 + $0xd0] sm:$0xff]  ;;  %v458_v45 = vld [vmem:[%s3512_s19 + $0x8] sm:$0xff]  ;;  %v536_v47 = vld [vmem:[#allocation9 + $0xf8] sm:$0xff] }
  0x9b   : > { %v534_v46 = vld [vmem:[#allocation9 + $0xe8] sm:$0xff]  ;;  %677 = vmatprep.mubr.f32.mxu0 %v458_v45  ;;  %v2439_v48 = vpack.c.bf16 %v531_v44, %v529_v43  ;;  %v533_v50 = vld [vmem:[#allocation9 + $0xe0] sm:$0xff]  ;;  %v535_v51 = vld [vmem:[#allocation9 + $0xf0] sm:$0xff] }
  0x9c   : > { %v2441_v49 = vpack.c.bf16 %v536_v47, %v534_v46  ;;  %v538_v52 = vld [vmem:[#allocation9 + $0x108] sm:$0xff]  ;;  %v540_v53 = vld [vmem:[#allocation9 + $0x118] sm:$0xff]  ;;  %v2443_v54 = vpack.c.bf16 %v535_v51, %v533_v50  ;;  %v537_v56 = vld [vmem:[#allocation9 + $0x100] sm:$0xff] }
  0x9d   : > { %2424 = vmatpush1.bf16.msra.mxu0 %v2423_v23  ;;  %v2445_v55 = vpack.c.bf16 %v540_v53, %v538_v52  ;;  %v539_v57 = vld [vmem:[#allocation9 + $0x110] sm:$0xff]  ;;  %v542_v58 = vld [vmem:[#allocation9 + $0x128] sm:$0xff]  ;;  %v544_v59 = vld [vmem:[#allocation9 + $0x138] sm:$0xff] }
  0x9e   : > { %2426 = vmatprep.subr.bf16.mxu0 %v2425_v24  ;;  %v2447_v60 = vpack.c.bf16 %v539_v57, %v537_v56  ;;  %v2449_v61 = vpack.c.bf16 %v544_v59, %v542_v58  ;;  %v541_v62 = vld [vmem:[#allocation9 + $0x120] sm:$0xff]  ;;  %v543_v63 = vld [vmem:[#allocation9 + $0x130] sm:$0xff]  ;;  %v546_v0 = vld [vmem:[#allocation9 + $0x148] sm:$0xff] }
  0x9f   : > { %v548_v1 = vld [vmem:[#allocation9 + $0x158] sm:$0xff]  ;;  %v2451_v2 = vpack.c.bf16 %v543_v63, %v541_v62  ;;  %v545_v4 = vld [vmem:[#allocation9 + $0x140] sm:$0xff]  ;;  %v547_v5 = vld [vmem:[#allocation9 + $0x150] sm:$0xff] }
  0xa0   : > { %v2453_v3 = vpack.c.bf16 %v548_v1, %v546_v0  ;;  %v550_v6 = vld [vmem:[#allocation9 + $0x168] sm:$0xff]  ;;  %v552_v7 = vld [vmem:[#allocation9 + $0x178] sm:$0xff]  ;;  %v2455_v8 = vpack.c.bf16 %v547_v5, %v545_v4  ;;  %v549_v10 = vld [vmem:[#allocation9 + $0x160] sm:$0xff] }
  0xa1   : > { %2428 = vmatpush1.bf16.msra.mxu0 %v2427_v29  ;;  %v2457_v9 = vpack.c.bf16 %v552_v7, %v550_v6  ;;  %v551_v11 = vld [vmem:[#allocation9 + $0x170] sm:$0xff]  ;;  %v554_v12 = vld [vmem:[#allocation9 + $0x188] sm:$0xff]  ;;  %v556_v13 = vld [vmem:[#allocation9 + $0x198] sm:$0xff] }
  0xa2   : > { %2430 = vmatprep.subr.bf16.mxu0 %v2429_v30  ;;  %v2459_v14 = vpack.c.bf16 %v551_v11, %v549_v10  ;;  %v2461_v15 = vpack.c.bf16 %v556_v13, %v554_v12  ;;  %v553_v16 = vld [vmem:[#allocation9 + $0x180] sm:$0xff]  ;;  %v555_v17 = vld [vmem:[#allocation9 + $0x190] sm:$0xff]  ;;  %v558_v18 = vld [vmem:[#allocation9 + $0x1a8] sm:$0xff] }
  0xa3   : > { %v560_v19 = vld [vmem:[#allocation9 + $0x1b8] sm:$0xff]  ;;  %v2463_v20 = vpack.c.bf16 %v555_v17, %v553_v16  ;;  %v557_v22 = vld [vmem:[#allocation9 + $0x1a0] sm:$0xff]  ;;  %v559_v23 = vld [vmem:[#allocation9 + $0x1b0] sm:$0xff] }
  0xa4   : > { %v2465_v21 = vpack.c.bf16 %v560_v19, %v558_v18  ;;  %v562_v24 = vld [vmem:[#allocation9 + $0x1c8] sm:$0xff]  ;;  %v564_v25 = vld [vmem:[#allocation9 + $0x1d8] sm:$0xff]  ;;  %v2467_v26 = vpack.c.bf16 %v559_v23, %v557_v22  ;;  %v561_v28 = vld [vmem:[#allocation9 + $0x1c0] sm:$0xff] }
  0xa5   : > { %2432 = vmatpush1.bf16.msra.mxu0 %v2431_v35  ;;  %v2469_v27 = vpack.c.bf16 %v564_v25, %v562_v24  ;;  %v563_v29 = vld [vmem:[#allocation9 + $0x1d0] sm:$0xff]  ;;  %v566_v30 = vld [vmem:[#allocation9 + $0x1e8] sm:$0xff]  ;;  %v568_v31 = vld [vmem:[#allocation9 + $0x1f8] sm:$0xff] }
  0xa6   : > { %2434 = vmatprep.subr.bf16.mxu0 %v2433_v36  ;;  %v2471_v32 = vpack.c.bf16 %v563_v29, %v561_v28  ;;  %v2473_v33 = vpack.c.bf16 %v568_v31, %v566_v30  ;;  %v565_v34 = vld [vmem:[#allocation9 + $0x1e0] sm:$0xff]  ;;  %v567_v35 = vld [vmem:[#allocation9 + $0x1f0] sm:$0xff]  ;;  %v570_v36 = vld [vmem:[#allocation9 + $0x208] sm:$0xff] }
  0xa7   : > { %v572_v37 = vld [vmem:[#allocation9 + $0x218] sm:$0xff]  ;;  %v2475_v38 = vpack.c.bf16 %v567_v35, %v565_v34  ;;  %v569_v40 = vld [vmem:[#allocation9 + $0x200] sm:$0xff]  ;;  %v574_v43 = vld [vmem:[#allocation9 + $0x228] sm:$0xff] }
  0xa8   : > { %v2477_v39 = vpack.c.bf16 %v572_v37, %v570_v36  ;;  %v576_v44 = vld [vmem:[#allocation9 + $0x238] sm:$0xff]  ;;  %v461_v45 = vld [vmem:[%s3512_s19 + $0x20] sm:$0xff]  ;;  %v575_v47 = vld [vmem:[#allocation9 + $0x230] sm:$0xff] }
  0xa9   : > { %2436 = vmatpush1.bf16.msra.mxu0 %v2435_v41  ;;  %v571_v41 = vld [vmem:[#allocation9 + $0x210] sm:$0xff]  ;;  %v573_v46 = vld [vmem:[#allocation9 + $0x220] sm:$0xff]  ;;  %v2481_v56 = vpack.c.bf16 %v576_v44, %v574_v43  ;;  %v578_v57 = vld [vmem:[#allocation9 + $0x248] sm:$0xff] }
  0xaa   : > { %2438 = vmatprep.subr.bf16.mxu0 %v2437_v42  ;;  %v457_v42 = vld [vmem:[%s3512_s19] sm:$0xff]  ;;  %v2479_v51 = vpack.c.bf16 %v571_v41, %v569_v40  ;;  %v580_v62 = vld [vmem:[#allocation9 + $0x258] sm:$0xff]  ;;  %v1099_v63 = vld [vmem:[#allocation11 + $0x88] sm:$0xff]  ;;  %v2483_v4 = vpack.c.bf16 %v575_v47, %v573_v46 }
  0xab   : > { %v1082_v50 = vld [vmem:[#allocation11] sm:$0xff]  ;;  %v1103_v0 = vld [vmem:[#allocation11 + $0xa8] sm:$0xff]  ;;  %v460_v1 = vld [vmem:[%s3512_s19 + $0x18] sm:$0xff]  ;;  %v2485_v7 = vpack.c.bf16 %v580_v62, %v578_v57 }
  0xac   : > { %v1086_v53 = vld [vmem:[#allocation11 + $0x20] sm:$0xff]  ;;  %v582_v10 = vld [vmem:[#allocation9 + $0x268] sm:$0xff]  ;;  %v2517_v11 = vpack.c.bf16 %v1103_v0, %v1099_v63  ;;  %v584_v12 = vld [vmem:[#allocation9 + $0x278] sm:$0xff] }
  0xad   : > { %2440 = vmatpush1.bf16.msra.mxu0 %v2439_v48  ;;  %v1083_v48 = vld [vmem:[#allocation11 + $0x8] sm:$0xff]  ;;  %v2511_v58 = vpack.c.bf16 %v1086_v53, %v1082_v50  ;;  %v1098_v5 = vld [vmem:[#allocation11 + $0x80] sm:$0xff]  ;;  %v467_v17 = vld [vmem:[%s3512_s19 + $0x50] sm:$0xff] }
  0xae   : > { %2442 = vmatprep.subr.bf16.mxu0 %v2441_v49  ;;  %v1087_v49 = vld [vmem:[#allocation11 + $0x28] sm:$0xff]  ;;  %v1102_v6 = vld [vmem:[#allocation11 + $0xa0] sm:$0xff]  ;;  %v583_v23 = vld [vmem:[#allocation9 + $0x270] sm:$0xff] }
  0xaf   : > { %v2509_v52 = vpack.c.bf16 %v1087_v49, %v1083_v48  ;;  %v1107_v13 = vld [vmem:[#allocation11 + $0xc8] sm:$0xff]  ;;  %v2519_v16 = vpack.c.bf16 %v1102_v6, %v1098_v5  ;;  %v1106_v19 = vld [vmem:[#allocation11 + $0xc0] sm:$0xff]  ;;  %v587_v37 = vld [vmem:[#allocation9 + $0x290] sm:$0xff] }
  0xb0   : > { %v581_v22 = vld [vmem:[#allocation9 + $0x260] sm:$0xff]  ;;  %v586_v24 = vld [vmem:[#allocation9 + $0x288] sm:$0xff]  ;;  %v592_v40 = vld [vmem:[#allocation9 + $0x2b8] sm:$0xff] }
  0xb1   : > { %2444 = vmatpush1.bf16.msra.mxu0 %v2443_v54  ;;  %v1091_v54 = vld [vmem:[#allocation11 + $0x48] sm:$0xff]  ;;  %2510 = vmatprep.subr.bf16.mxu1 %v2509_v52  ;;  %v1118_v34 = vld [vmem:[#allocation11 + $0x120] sm:$0xff]  ;;  %v472_v57 = vld [vmem:[%s3512_s19 + $0x78] sm:$0xff] }
  0xb2   : > { %2446 = vmatprep.subr.bf16.mxu0 %v2445_v55  ;;  %v1095_v55 = vld [vmem:[#allocation11 + $0x68] sm:$0xff]  ;;  %2512 = vmatpush1.bf16.msra.mxu1 %v2511_v58  ;;  %v585_v36 = vld [vmem:[#allocation9 + $0x280] sm:$0xff] }
  0xb3   : > { %v2513_v59 = vpack.c.bf16 %v1095_v55, %v1091_v54  ;;  %v1119_v28 = vld [vmem:[#allocation11 + $0x128] sm:$0xff]  ;;  %v469_v43 = vld [vmem:[%s3512_s19 + $0x60] sm:$0xff]  ;;  %v2495_v46 = vpack.c.bf16 %v587_v37, %v585_v36  ;;  %v596_v54 = vld [vmem:[#allocation9 + $0x2d8] sm:$0xff] }
  0xb4   : > { %v466_v29 = vld [vmem:[%s3512_s19 + $0x48] sm:$0xff]  ;;  %v1122_v47 = vld [vmem:[#allocation11 + $0x140] sm:$0xff]  ;;  %v484_v37 = vld [vmem:[%s3512_s19 + $0xd8] sm:$0xff] }
  0xb5   : > { %2448 = vmatpush1.bf16.msra.mxu0 %v2447_v60  ;;  %v1090_v60 = vld [vmem:[#allocation11 + $0x40] sm:$0xff]  ;;  %2514 = vmatprep.subr.bf16.mxu1 %v2513_v59  ;;  %v470_v31 = vld [vmem:[%s3512_s19 + $0x68] sm:$0xff]  ;;  %v476_v59 = vld [vmem:[%s3512_s19 + $0x98] sm:$0xff] }
  0xb6   : > { %2450 = vmatprep.subr.bf16.mxu0 %v2449_v61  ;;  %v1094_v61 = vld [vmem:[#allocation11 + $0x60] sm:$0xff]  ;;  %v1123_v41 = vld [vmem:[#allocation11 + $0x148] sm:$0xff] }
  0xb7   : > { %v1126_v48 = vld [vmem:[#allocation11 + $0x160] sm:$0xff]  ;;  %v594_v52 = vld [vmem:[#allocation9 + $0x2c8] sm:$0xff] }
  0xb8   : > { %v589_v50 = vld [vmem:[#allocation9 + $0x2a0] sm:$0xff]  ;;  %v1131_v55 = vld [vmem:[#allocation11 + $0x188] sm:$0xff]  ;;  %v2531_v58 = vpack.c.bf16 %v1126_v48, %v1122_v47  ;;  %v2501_v63 = vpack.c.bf16 %v596_v54, %v594_v52 }
  0xb9   : > { %2452 = vmatpush1.bf16.msra.mxu0 %v2451_v2  ;;  %v2515_v2 = vpack.c.bf16 %v1094_v61, %v1090_v60  ;;  %v1130_v61 = vld [vmem:[#allocation11 + $0x180] sm:$0xff]  ;;  %v1139_v5 = vld [vmem:[#allocation11 + $0x1c8] sm:$0xff] }
  0xba   : > { %2454 = vmatprep.subr.bf16.mxu0 %v2453_v3  ;;  %v464_v3 = vld [vmem:[%s3512_s19 + $0x38] sm:$0xff]  ;;  %v1134_v62 = vld [vmem:[#allocation11 + $0x1a0] sm:$0xff]  ;;  %v1143_v6 = vld [vmem:[#allocation11 + $0x1e8] sm:$0xff] }
  0xbb   : > { %2516 = vmatpush1.bf16.msra.mxu1 %v2515_v2  ;;  %v593_v0 = vld [vmem:[#allocation9 + $0x2c0] sm:$0xff]  ;;  %v598_v2 = vld [vmem:[#allocation9 + $0x2e8] sm:$0xff] }
  0xbc   : > { %2518 = vmatprep.subr.bf16.mxu1 %v2517_v11  ;;  %v1142_v11 = vld [vmem:[#allocation11 + $0x1e0] sm:$0xff] }
  0xbd   : > { %2456 = vmatpush1.bf16.msra.mxu0 %v2455_v8  ;;  %v577_v8 = vld [vmem:[#allocation9 + $0x240] sm:$0xff] }
  0xbe   : > { %2458 = vmatprep.subr.bf16.mxu0 %v2457_v9  ;;  %v579_v9 = vld [vmem:[#allocation9 + $0x250] sm:$0xff]  ;;  %v1170_v47 = vld [vmem:[#allocation11 + $0x2c0] sm:$0xff] }
  0xbf   : > { %v2487_v18 = vpack.c.bf16 %v579_v9, %v577_v8  ;;  %2520 = vmatpush1.bf16.msra.mxu1 %v2519_v16  ;;  %v475_v8 = vld [vmem:[%s3512_s19 + $0x90] sm:$0xff]  ;;  %v2537_v16 = vpack.c.bf16 %v1143_v6, %v1139_v5  ;;  %v1174_v48 = vld [vmem:[#allocation11 + $0x2e0] sm:$0xff]  ;;  %v496_v5 = vld [vmem:[%s3512_s19 + $0x138] sm:$0xff] }
  0xc0   : > { %v2555_v52 = vpack.c.bf16 %v1174_v48, %v1170_v47 }
  0xc1   : > { %2460 = vmatpush1.bf16.msra.mxu0 %v2459_v14  ;;  %v1111_v14 = vld [vmem:[#allocation11 + $0xe8] sm:$0xff] }
  0xc2   : > { %2462 = vmatprep.subr.bf16.mxu0 %v2461_v15  ;;  %v463_v15 = vld [vmem:[%s3512_s19 + $0x30] sm:$0xff]  ;;  %v2521_v25 = vpack.c.bf16 %v1111_v14, %v1107_v13  ;;  %v597_v14 = vld [vmem:[#allocation9 + $0x2e0] sm:$0xff] }
  0xc4   : > { %2522 = vmatprep.subr.bf16.mxu1 %v2521_v25 }
  0xc5   : > { %2464 = vmatpush1.bf16.msra.mxu0 %v2463_v20  ;;  %v1110_v20 = vld [vmem:[#allocation11 + $0xe0] sm:$0xff] }
  0xc6   : > { %2466 = vmatprep.subr.bf16.mxu0 %v2465_v21  ;;  %v2489_v21 = vpack.c.bf16 %v584_v12, %v582_v10  ;;  %v2523_v30 = vpack.c.bf16 %v1110_v20, %v1106_v19  ;;  %v1138_v10 = vld [vmem:[#allocation11 + $0x1c0] sm:$0xff]  ;;  %v479_v12 = vld [vmem:[%s3512_s19 + $0xb0] sm:$0xff]  ;;  %v478_v20 = vld [vmem:[%s3512_s19 + $0xa8] sm:$0xff] }
  0xc7   : > { %v2539_v19 = vpack.c.bf16 %v1142_v11, %v1138_v10  ;;  %v499_v11 = vld [vmem:[%s3512_s19 + $0x150] sm:$0xff] }
  0xc8   : > { %2524 = vmatpush1.bf16.msra.mxu1 %v2523_v30 }
  0xc9   : > { %2468 = vmatpush1.bf16.msra.mxu0 %v2467_v26  ;;  %v588_v26 = vld [vmem:[#allocation9 + $0x298] sm:$0xff] }
  0xca   : > { %2470 = vmatprep.subr.bf16.mxu0 %v2469_v27  ;;  %v1115_v27 = vld [vmem:[#allocation11 + $0x108] sm:$0xff]  ;;  %v2493_v35 = vpack.c.bf16 %v588_v26, %v586_v24 }
  0xcb   : > { %v482_v24 = vld [vmem:[%s3512_s19 + $0xc8] sm:$0xff] }
  0xcc   : > { %v1155_v26 = vld [vmem:[#allocation11 + $0x248] sm:$0xff] }
  0xcd   : > { %2472 = vmatpush1.bf16.msra.mxu0 %v2471_v32  ;;  %v2491_v32 = vpack.c.bf16 %v583_v23, %v581_v22  ;;  %v1146_v22 = vld [vmem:[#allocation11 + $0x200] sm:$0xff] }
  0xce   : > { %2474 = vmatprep.subr.bf16.mxu0 %v2473_v33  ;;  %v1114_v33 = vld [vmem:[#allocation11 + $0x100] sm:$0xff] }
  0xcf   : > { %v2527_v44 = vpack.c.bf16 %v1118_v34, %v1114_v33  ;;  %v1150_v23 = vld [vmem:[#allocation11 + $0x220] sm:$0xff]  ;;  %v1163_v34 = vld [vmem:[#allocation11 + $0x288] sm:$0xff] }
  0xd0   : > { %v485_v33 = vld [vmem:[%s3512_s19 + $0xe0] sm:$0xff] }
  0xd1   : > { %2476 = vmatpush1.bf16.msra.mxu0 %v2475_v38  ;;  %v590_v38 = vld [vmem:[#allocation9 + $0x2a8] sm:$0xff] }
  0xd2   : > { %2478 = vmatprep.subr.bf16.mxu0 %v2477_v39  ;;  %v2525_v39 = vpack.c.bf16 %v1119_v28, %v1115_v27  ;;  %v2497_v49 = vpack.c.bf16 %v592_v40, %v590_v38  ;;  %v1159_v27 = vld [vmem:[#allocation11 + $0x268] sm:$0xff]  ;;  %v2543_v28 = vpack.c.bf16 %v1150_v23, %v1146_v22  ;;  %v1166_v40 = vld [vmem:[#allocation11 + $0x2a0] sm:$0xff]  ;;  %v480_v22 = vld [vmem:[%s3512_s19 + $0xb8] sm:$0xff] }
  0xd3   : > { %v2545_v30 = vpack.c.bf16 %v1159_v27, %v1155_v26  ;;  %v483_v23 = vld [vmem:[%s3512_s19 + $0xd0] sm:$0xff]  ;;  %v492_v26 = vld [vmem:[%s3512_s19 + $0x118] sm:$0xff] }
  0xd4   : > { %678 = vmatmul.mubr.f32.vlgmr.msra.gmra.mrb[0].mxu0 %v457_v42  ;;  %v1127_v42 = vld [vmem:[#allocation11 + $0x168] sm:$0xff]  ;;  %2526 = vmatprep.subr.bf16.mxu1 %v2525_v39  ;;  %v1162_v39 = vld [vmem:[#allocation11 + $0x280] sm:$0xff]  ;;  %v495_v27 = vld [vmem:[%s3512_s19 + $0x130] sm:$0xff] }
  0xd5   : > { %2480 = vmatpush1.bf16.msra.mxu0 %v2479_v51  ;;  %683 = vmatprep.mubr.f32.mxu0 %v461_v45  ;;  %v473_v45 = vld [vmem:[%s3512_s19 + $0x80] sm:$0xff]  ;;  %v591_v51 = vld [vmem:[#allocation9 + $0x2b0] sm:$0xff]  ;;  %v2529_v53 = vpack.c.bf16 %v1127_v42, %v1123_v41  ;;  %v488_v41 = vld [vmem:[%s3512_s19 + $0xf8] sm:$0xff] }
  0xd6   : > { %2482 = vmatprep.subr.bf16.mxu0 %v2481_v56  ;;  %v1135_v56 = vld [vmem:[#allocation11 + $0x1a8] sm:$0xff]  ;;  %2528 = vmatpush1.bf16.msra.mxu1 %v2527_v44  ;;  %v2499_v60 = vpack.c.bf16 %v591_v51, %v589_v50  ;;  %v2551_v44 = vpack.c.bf16 %v1166_v40, %v1162_v39  ;;  %v4546_v40 = vlaneseq }
  0xd7   : > { %2530 = vmatprep.subr.bf16.mxu1 %v2529_v53  ;;  %v1171_v42 = vld [vmem:[#allocation11 + $0x2c8] sm:$0xff] }
  0xd8   : > { %684 = vmatmul.mubr.f32.gmra.mrb[2].mxu0 %v460_v1  ;;  %v595_v1 = vld [vmem:[#allocation9 + $0x2d0] sm:$0xff]  ;;  %v1179_v50 = vld [vmem:[#allocation11 + $0x308] sm:$0xff] }
  0xd9   : > { %689 = vmatprep.mubr.f32.mxu0 %v464_v3  ;;  %2484 = vmatpush1.bf16.msra.mxu0 %v2483_v4  ;;  %v2533_v3 = vpack.c.bf16 %v1135_v56, %v1131_v55  ;;  %v600_v4 = vld [vmem:[#allocation9 + $0x2f8] sm:$0xff]  ;;  %v2503_v9 = vpack.c.bf16 %v595_v1, %v593_v0  ;;  %v1183_v51 = vld [vmem:[#allocation11 + $0x328] sm:$0xff]  ;;  %v1178_v55 = vld [vmem:[#allocation11 + $0x300] sm:$0xff] }
  0xda   : > { %2486 = vmatprep.subr.bf16.mxu0 %v2485_v7  ;;  %2532 = vmatpush1.bf16.msra.mxu1 %v2531_v58  ;;  %v2535_v7 = vpack.c.bf16 %v1134_v62, %v1130_v61  ;;  %v2505_v13 = vpack.c.bf16 %v600_v4, %v598_v2  ;;  %v490_v53 = vld [vmem:[%s3512_s19 + $0x108] sm:$0xff]  ;;  %v2557_v54 = vpack.c.bf16 %v1183_v51, %v1179_v50  ;;  %v1182_v56 = vld [vmem:[#allocation11 + $0x320] sm:$0xff] }
  0xdb   : > { %2534 = vmatprep.subr.bf16.mxu1 %v2533_v3  ;;  %v1187_v58 = vld [vmem:[#allocation11 + $0x348] sm:$0xff]  ;;  %v493_v61 = vld [vmem:[%s3512_s19 + $0x120] sm:$0xff] }
  0xdc   : > { %690 = vmatmul.mubr.f32.gmra.mrb[4].mxu0 %v463_v15  ;;  %v599_v15 = vld [vmem:[#allocation9 + $0x2f0] sm:$0xff]  ;;  %v1190_v0 = vld [vmem:[#allocation11 + $0x360] sm:$0xff]  ;;  %v1195_v2 = vld [vmem:[#allocation11 + $0x388] sm:$0xff] }
  0xdd   : > { %695 = vmatprep.mubr.f32.mxu0 %v467_v17  ;;  %2488 = vmatpush1.bf16.msra.mxu0 %v2487_v18  ;;  %v1147_v17 = vld [vmem:[#allocation11 + $0x208] sm:$0xff]  ;;  %v497_v1 = vld [vmem:[%s3512_s19 + $0x140] sm:$0xff] }
  0xde   : > { %2490 = vmatprep.subr.bf16.mxu0 %v2489_v21  ;;  %v1151_v18 = vld [vmem:[#allocation11 + $0x228] sm:$0xff]  ;;  %2536 = vmatpush1.bf16.msra.mxu1 %v2535_v7  ;;  %v2507_v21 = vpack.c.bf16 %v599_v15, %v597_v14  ;;  %v1194_v7 = vld [vmem:[#allocation11 + $0x380] sm:$0xff]  ;;  %v4548_v14 = vmov 0.0   ;;  %v459_v15 = vld [vmem:[%s3512_s19 + $0x10] sm:$0xff] }
  0xdf   : > { %2538 = vmatprep.subr.bf16.mxu1 %v2537_v16  ;;  %v2541_v25 = vpack.c.bf16 %v1151_v18, %v1147_v17  ;;  %v1199_v3 = vld [vmem:[#allocation11 + $0x3a8] sm:$0xff]  ;;  %v465_v17 = vld [vmem:[%s3512_s19 + $0x40] sm:$0xff]  ;;  %v468_v18 = vld [vmem:[%s3512_s19 + $0x58] sm:$0xff] }
  0xe0   : > { %696 = vmatmul.mubr.f32.gmra.mrb[6].mxu0 %v466_v29  ;;  %v481_v29 = vld [vmem:[%s3512_s19 + $0xc0] sm:$0xff]  ;;  %v2565_v6 = vpack.c.bf16 %v1199_v3, %v1195_v2  ;;  %v462_v16 = vld [vmem:[%s3512_s19 + $0x28] sm:$0xff]  ;;  %v1092_v3 = vld [vmem:[#allocation11 + $0x50] sm:$0xff] }
  0xe1   : > { %701 = vmatprep.mubr.f32.mxu0 %v470_v31  ;;  %2492 = vmatpush1.bf16.msra.mxu0 %v2491_v32  ;;  %v1154_v31 = vld [vmem:[#allocation11 + $0x240] sm:$0xff] }
  0xe2   : > { %2494 = vmatprep.subr.bf16.mxu0 %v2493_v35  ;;  %2540 = vmatpush1.bf16.msra.mxu1 %v2539_v19  ;;  %v1158_v32 = vld [vmem:[#allocation11 + $0x260] sm:$0xff]  ;;  %v1167_v35 = vld [vmem:[#allocation11 + $0x2a8] sm:$0xff]  ;;  %v471_v19 = vld [vmem:[%s3512_s19 + $0x70] sm:$0xff] }
  0xe3   : > { %2542 = vmatprep.subr.bf16.mxu1 %v2541_v25  ;;  %v2547_v36 = vpack.c.bf16 %v1158_v32, %v1154_v31  ;;  %v2549_v38 = vpack.c.bf16 %v1167_v35, %v1163_v34  ;;  %v489_v25 = vld [vmem:[%s3512_s19 + $0x100] sm:$0xff]  ;;  %v1203_v31 = vld [vmem:[#allocation11 + $0x3c8] sm:$0xff] }
  0xe4   : > { %702 = vmatmul.mubr.f32.gmra.mrb[8].mxu0 %v469_v43  ;;  %v1175_v43 = vld [vmem:[#allocation11 + $0x2e8] sm:$0xff]  ;;  %v1202_v34 = vld [vmem:[#allocation11 + $0x3c0] sm:$0xff] }
  0xe5   : > { %707 = vmatprep.mubr.f32.mxu0 %v473_v45  ;;  %2496 = vmatpush1.bf16.msra.mxu0 %v2495_v46  ;;  %v487_v45 = vld [vmem:[%s3512_s19 + $0xf0] sm:$0xff]  ;;  %v2553_v46 = vpack.c.bf16 %v1175_v43, %v1171_v42  ;;  %v1207_v32 = vld [vmem:[#allocation11 + $0x3e8] sm:$0xff]  ;;  %v1206_v35 = vld [vmem:[#allocation11 + $0x3e0] sm:$0xff] }
  0xe6   : > { %2498 = vmatprep.subr.bf16.mxu0 %v2497_v49  ;;  %2544 = vmatpush1.bf16.msra.mxu1 %v2543_v28  ;;  %v491_v49 = vld [vmem:[%s3512_s19 + $0x110] sm:$0xff]  ;;  %v498_v28 = vld [vmem:[%s3512_s19 + $0x148] sm:$0xff]  ;;  %v601_v43 = vld [vmem:[%s4525_s2] sm:$0x3] }
  0xe7   : > { %2546 = vmatprep.subr.bf16.mxu1 %v2545_v30  ;;  %v504_v30 = vld [vmem:[%s3512_s19 + $0x178] sm:$0xff] }
  0xe8   : > { %708 = vmatmul.mubr.f32.gmra.mrb[10].mxu0 %v472_v57  ;;  %v494_v57 = vld [vmem:[%s3512_s19 + $0x128] sm:$0xff] }
  0xe9   : > { %713 = vmatprep.mubr.f32.mxu0 %v476_v59  ;;  %2500 = vmatpush1.bf16.msra.mxu0 %v2499_v60  ;;  %v1191_v59 = vld [vmem:[#allocation11 + $0x368] sm:$0xff]  ;;  %v2559_v60 = vpack.c.bf16 %v1182_v56, %v1178_v55  ;;  %v1093_v56 = vld [vmem:[#allocation11 + $0x58] sm:$0xff] }
  0xea   : > { %2502 = vmatprep.subr.bf16.mxu0 %v2501_v63  ;;  %2548 = vmatpush1.bf16.msra.mxu1 %v2547_v36  ;;  %v2561_v62 = vpack.c.bf16 %v1191_v59, %v1187_v58  ;;  %v1186_v63 = vld [vmem:[#allocation11 + $0x340] sm:$0xff]  ;;  %v2571_v36 = vpack.c.bf16 %v1206_v35, %v1202_v34  ;;  %v1108_v34 = vld [vmem:[#allocation11 + $0xd0] sm:$0xff] }
  0xeb   : > { %2550 = vmatprep.subr.bf16.mxu1 %v2549_v38  ;;  %v2563_v4 = vpack.c.bf16 %v1190_v0, %v1186_v63  ;;  %v1089_v38 = vld [vmem:[#allocation11 + $0x38] sm:$0xff]  ;;  %v1112_v35 = vld [vmem:[#allocation11 + $0xf0] sm:$0xff] }
  0xec   : > { %714 = vmatmul.mubr.f32.gmra.mrb[12].mxu0 %v475_v8  ;;  %v1198_v8 = vld [vmem:[#allocation11 + $0x3a0] sm:$0xff] }
  0xed   : > { %719 = vmatprep.mubr.f32.mxu0 %v479_v12  ;;  %2504 = vmatpush1.bf16.msra.mxu0 %v2503_v9  ;;  %v500_v9 = vld [vmem:[%s3512_s19 + $0x158] sm:$0xff]  ;;  %v2567_v10 = vpack.c.bf16 %v1198_v8, %v1194_v7  ;;  %v503_v12 = vld [vmem:[%s3512_s19 + $0x170] sm:$0xff] }
  0xee   : > { %2506 = vmatprep.subr.bf16.mxu0 %v2505_v13  ;;  %2552 = vmatpush1.bf16.msra.mxu1 %v2551_v44  ;;  %v502_v13 = vld [vmem:[%s3512_s19 + $0x168] sm:$0xff]  ;;  %v1105_v7 = vld [vmem:[#allocation11 + $0xb8] sm:$0xff] }
  0xef   : > { %2554 = vmatprep.subr.bf16.mxu1 %v2553_v46 }
  0xf0   : > { %720 = vmatmul.mubr.f32.gmra.mrb[14].mxu0 %v478_v20  ;;  %v474_v20 = vld [vmem:[%s3512_s19 + $0x88] sm:$0xff] }
  0xf1   : > { %725 = vmatprep.mubr.f32.mxu0 %v482_v24  ;;  %2508 = vmatpush1.bf16.msra.mxu0 %v2507_v21  ;;  %v477_v21 = vld [vmem:[%s3512_s19 + $0xa0] sm:$0xff]  ;;  %v486_v24 = vld [vmem:[%s3512_s19 + $0xe8] sm:$0xff] }
  0xf2   : > { %2556 = vmatpush1.bf16.msra.mxu1 %v2555_v52 }
  0xf3   : > { %2558 = vmatprep.subr.bf16.mxu1 %v2557_v54  ;;  %v1088_v54 = vld [vmem:[#allocation11 + $0x30] sm:$0xff] }
  0xf4   : > { %726 = vmatmul.mubr.f32.gmra.mrb[16].mxu0 %v481_v29  ;;  %v501_v29 = vld [vmem:[%s3512_s19 + $0x160] sm:$0xff] }
  0xf5   : > { %731 = vmatprep.mubr.f32.mxu0 %v485_v33  ;;  %v2569_v33 = vpack.c.bf16 %v1207_v32, %v1203_v31 }
  0xf6   : > { %2560 = vmatpush1.bf16.msra.mxu1 %v2559_v60 }
  0xf7   : > { %2562 = vmatprep.subr.bf16.mxu1 %v2561_v62 }
  0xf8   : > { %732 = vmatmul.mubr.f32.gmra.mrb[18].mxu0 %v484_v37  ;;  %v1085_v37 = vld [vmem:[#allocation11 + $0x18] sm:$0xff] }
  0xf9   : > { %737 = vmatprep.mubr.f32.mxu0 %v488_v41  ;;  %v2573_v39 = vpack.c.bf16 %v1089_v38, %v1085_v37  ;;  %v3590_v41 = vshrl.u32 %v4546_v40, 7  ;;  %v1117_v37 = vld [vmem:[#allocation11 + $0x118] sm:$0xff] }
  0xfa   : > { %2564 = vmatpush1.bf16.msra.mxu1 %v2563_v4  ;;  %v1096_v4 = vld [vmem:[#allocation11 + $0x70] sm:$0xff]  ;;  %v1121_v38 = vld [vmem:[#allocation11 + $0x138] sm:$0xff] }
  0xfb   : > { %2566 = vmatprep.subr.bf16.mxu1 %v2565_v6  ;;  %4580 = vst [vmem:[#allocation24_spill] sm:$0xff] %v3590_v41  ;;  %v3593_v42 = vsub.s32 0, %v3590_v41  ;;  %v3600_v44 = vsub.s32 1, %v3590_v41  ;;  %v971_v59 = vadd.s32 16, %v3590_v41  ;;  %v1101_v6 = vld [vmem:[#allocation11 + $0x98] sm:$0xff] }
  0xfc   : > { %738 = vmatmul.mubr.f32.gmra.mrb[20].mxu0 %v487_v45  ;;  %v3602_v45 = vstv %s2273_s29 }
  0xfd   : > { %743 = vmatprep.mubr.f32.mxu0 %v491_v49  ;;  %4581 = vst [vmem:[#allocation25_spill] sm:$0xff] %v3593_v42  ;;  %4582 = vst [vmem:[#allocation26_spill] sm:$0xff] %v3600_v44  ;;  %v3605_v46 = vrot.slane %v601_v43, %v3593_v42  ;;  %v3608_v47 = vrot.slane %v601_v43, %v3600_v44  ;;  %v3612_v48 = vadd.s32 %v3602_v45, %v3590_v41  ;;  %v1196_v42 = vld [vmem:[#allocation11 + $0x390] sm:$0xff] }
  0xfe   : > { %2568 = vmatpush1.bf16.msra.mxu1 %v2567_v10  ;;  %v970_v49 = vadd.s32 8, %v3590_v41  ;;  %v972_v10 = vadd.s32 24, %v3590_v41  ;;  %v1200_v44 = vld [vmem:[#allocation11 + $0x3b0] sm:$0xff] }
  0xff   : > { %2570 = vmatprep.subr.bf16.mxu1 %v2569_v33  ;;  %vm1002_vm2 = vcmp.lt.s32.totalorder %v3612_v48, 500 }
 0x100   : > { %744 = vmatmul.mubr.f32.gmra.mrb[22].mxu0 %v490_v53  ;;  %v1084_v53 = vld [vmem:[#allocation11 + $0x10] sm:$0xff]  ;;  %v3619_v58 = vadd.s32 %v3602_v45, %v970_v49  ;;  %v974_v49 = vadd.s32 40, %v3590_v41 }
 0x101   : > { %749 = vmatprep.mubr.f32.mxu0 %v494_v57  ;;  %v1097_v57 = vld [vmem:[#allocation11 + $0x78] sm:$0xff]  ;;  %v2575_v62 = vpack.c.bf16 %v1088_v54, %v1084_v53 }
 0x102   : > { %2572 = vmatpush1.bf16.msra.mxu1 %v2571_v36  ;;  %v2577_v2 = vpack.c.bf16 %v1097_v57, %v1093_v56  ;;  %vm1003_vm3 = vcmp.lt.s32.totalorder %v3619_v58, 500  ;;  %v2589_v56 = vpack.c.bf16 %v1121_v38, %v1117_v37  ;;  %v1116_v57 = vld [vmem:[#allocation11 + $0x110] sm:$0xff] }
 0x103   : > { %2574 = vmatprep.subr.bf16.mxu1 %v2573_v39  ;;  %v1184_v37 = vld [vmem:[#allocation11 + $0x330] sm:$0xff] }
 0x104   : > { %750 = vmatmul.mubr.f32.gmra.mrb[24].mxu0 %v493_v61 }
 0x105   : > { %755 = vmatprep.mubr.f32.mxu0 %v497_v1 }
 0x108   : > { %756 = vmatmul.mubr.f32.gmra.mrb[26].mxu0 %v496_v5 }
 0x109   : > { %761 = vmatprep.mubr.f32.mxu0 %v500_v9  ;;  %v3638_v9 = vadd.s32 %v3602_v45, %v971_v59  ;;  %v1120_v59 = vld [vmem:[#allocation11 + $0x130] sm:$0xff] }
 0x10b   : > { %vm1004_vm4 = vcmp.lt.s32.totalorder %v3638_v9, 500 }
 0x10c   : > { %762 = vmatmul.mubr.f32.gmra.mrb[28].mxu0 %v499_v11 }
 0x10d   : > { %767 = vmatprep.mubr.f32.mxu0 %v503_v12 }
 0x110   : > { %768 = vmatmul.mubr.f32.gmra.mrb[30].mxu0 %v502_v13  ;;  %v2579_v13 = vpack.c.bf16 %v1096_v4, %v1092_v3  ;;  %v975_v3 = vadd.s32 48, %v3590_v41 }
 0x111   : > { %838 = vmatprep.mubr.f32.mxu0 %v4548_v14 }
 0x114   : > { %839 = vmatmul.mubr.f32.vlgmr.msra.gmra.mrb[0].mxu0 %v459_v15  ;;  %v1192_v15 = vld [vmem:[#allocation11 + $0x370] sm:$0xff] }
 0x115   : > { %844 = vmatprep.mubr.f32.mxu0 %v4548_v14 }
 0x118   : > { %845 = vmatmul.mubr.f32.gmra.mrb[2].mxu0 %v462_v16 }
 0x119   : > { %850 = vmatprep.mubr.f32.mxu0 %v4548_v14 }
 0x11c   : > { %851 = vmatmul.mubr.f32.gmra.mrb[4].mxu0 %v465_v17 }
 0x11d   : > { %856 = vmatprep.mubr.f32.mxu0 %v4548_v14 }
 0x120   : > { %857 = vmatmul.mubr.f32.gmra.mrb[6].mxu0 %v468_v18  ;;  %v2581_v18 = vpack.c.bf16 %v1105_v7, %v1101_v6  ;;  %v2591_v6 = vpack.c.bf16 %v1120_v59, %v1116_v57 }
 0x121   : > { %862 = vmatprep.mubr.f32.mxu0 %v4548_v14 }
 0x124   : > { %863 = vmatmul.mubr.f32.gmra.mrb[8].mxu0 %v471_v19  ;;  %v1100_v19 = vld [vmem:[#allocation11 + $0x90] sm:$0xff] }
 0x125   : > { %868 = vmatprep.mubr.f32.mxu0 %v4548_v14 }
 0x128   : > { %869 = vmatmul.mubr.f32.gmra.mrb[10].mxu0 %v474_v20  ;;  %v1104_v20 = vld [vmem:[#allocation11 + $0xb0] sm:$0xff] }
 0x129   : > { %874 = vmatprep.mubr.f32.mxu0 %v4548_v14 }
 0x12c   : > { %875 = vmatmul.mubr.f32.gmra.mrb[12].mxu0 %v477_v21 }
 0x12d   : > { %880 = vmatprep.mubr.f32.mxu0 %v4548_v14 }
 0x130   : > { %881 = vmatmul.mubr.f32.gmra.mrb[14].mxu0 %v480_v22 }
 0x131   : > { %886 = vmatprep.mubr.f32.mxu0 %v4548_v14 }
 0x134   : > { %887 = vmatmul.mubr.f32.gmra.mrb[16].mxu0 %v483_v23  ;;  %v1109_v23 = vld [vmem:[#allocation11 + $0xd8] sm:$0xff] }
 0x135   : > { %892 = vmatprep.mubr.f32.mxu0 %v4548_v14 }
 0x138   : > { %893 = vmatmul.mubr.f32.gmra.mrb[18].mxu0 %v486_v24  ;;  %v1113_v24 = vld [vmem:[#allocation11 + $0xf8] sm:$0xff] }
 0x139   : > { %898 = vmatprep.mubr.f32.mxu0 %v4548_v14  ;;  %v2585_v33 = vpack.c.bf16 %v1113_v24, %v1109_v23  ;;  %v3714_v23 = vadd.s32 %v3602_v45, %v975_v3  ;;  %v976_v24 = vadd.s32 56, %v3590_v41  ;;  %v1140_v3 = vld [vmem:[#allocation11 + $0x1d0] sm:$0xff] }
 0x13b   : > { %vm1008_vm8 = vcmp.lt.s32.totalorder %v3714_v23, 500 }
 0x13c   : > { %899 = vmatmul.mubr.f32.gmra.mrb[20].mxu0 %v489_v25  ;;  %v3657_v25 = vadd.s32 %v3602_v45, %v972_v10 }
 0x13d   : > { %904 = vmatprep.mubr.f32.mxu0 %v4548_v14 }
 0x13e   : > { %vm1005_vm5 = vcmp.lt.s32.totalorder %v3657_v25, 500 }
 0x140   : > { %905 = vmatmul.mubr.f32.gmra.mrb[22].mxu0 %v492_v26  ;;  %v973_v26 = vadd.s32 32, %v3590_v41 }
 0x141   : > { %910 = vmatprep.mubr.f32.mxu0 %v4548_v14 }
 0x142   : > { %v3676_v43 = vadd.s32 %v3602_v45, %v973_v26 }
 0x144   : > { %911 = vmatmul.mubr.f32.gmra.mrb[24].mxu0 %v495_v27  ;;  %vm1006_vm6 = vcmp.lt.s32.totalorder %v3676_v43, 500 }
 0x145   : > { %916 = vmatprep.mubr.f32.mxu0 %v4548_v14 }
 0x148   : > { %917 = vmatmul.mubr.f32.gmra.mrb[26].mxu0 %v498_v28 }
 0x149   : > { %922 = vmatprep.mubr.f32.mxu0 %v4548_v14 }
 0x14c   : > { %923 = vmatmul.mubr.f32.gmra.mrb[28].mxu0 %v501_v29  ;;  %v2583_v29 = vpack.c.bf16 %v1104_v20, %v1100_v19  ;;  %v1133_v19 = vld [vmem:[#allocation11 + $0x198] sm:$0xff] }
 0x14d   : > { %928 = vmatprep.mubr.f32.mxu0 %v4548_v14  ;;  %v1137_v20 = vld [vmem:[#allocation11 + $0x1b8] sm:$0xff] }
 0x150   : > { %929 = vmatmul.mubr.f32.gmra.mrb[30].mxu0 %v504_v30 }
 0x1e7   : > { %v840_v50 = vpop.f32.mrb[0].mxu0 }
 0x1e8   : > { %v2749_v51 = vadd.f32 %v840_v50, %v3605_v46  ;;  %v842_v52 = vpop.f32.mrb[1].mxu0 }
 0x1e9   : > { %v2750_v55 = vadd.f32 %v842_v52, %v3608_v47  ;;  %v2587_v52 = vpack.c.bf16 %v1112_v35, %v1108_v34  ;;  %v2597_v34 = vpack.c.bf16 %v1137_v20, %v1133_v19  ;;  %v1132_v35 = vld [vmem:[#allocation11 + $0x190] sm:$0xff] }
 0x1ea   : > { %v3624_v63 = vmax.f32 %v2749_v51, 0.0 }
 0x1eb   : > { %v3622_v60 = vmax.f32 %v2750_v55, 0.0  ;;  %v846_v61 = vpop.f32.mrb[2].mxu0 }
 0x1ec   : > { %v2751_v0 = vadd.f32 %v846_v61, %v3605_v46  ;;  %v848_v1 = vpop.f32.mrb[3].mxu0  ;;  %v1188_v61 = vld [vmem:[#allocation11 + $0x350] sm:$0xff] }
 0x1ed   : > { %v2752_v5 = vadd.f32 %v848_v1, %v3608_v47  ;;  %2274 = vmatprep.mubr.msk.f32.mxu1 %vm1002_vm2, %v3622_v60  ;;  %v1129_v1 = vld [vmem:[#allocation11 + $0x178] sm:$0xff] }
 0x1ee   : > { %v3631_v8 = vmax.f32 %v2751_v0, 0.0  ;;  %2275 = vmatmul.mubr.msk.f32.vlgmr.msra.gmra.mrb[0].mxu1 %vm1002_vm2, %v3624_v63  ;;  %v1125_v0 = vld [vmem:[#allocation11 + $0x158] sm:$0xff] }
 0x1ef   : > { %v3641_v11 = vmax.f32 %v2752_v5, 0.0  ;;  %2576 = vmatpush1.bf16.msra.mxu1 %v2575_v62  ;;  %v852_v12 = vpop.f32.mrb[4].mxu0 }
 0x1f0   : > { %v2753_v16 = vadd.f32 %v852_v12, %v3605_v46  ;;  %v854_v17 = vpop.f32.mrb[5].mxu0  ;;  %2578 = vmatprep.subr.bf16.mxu1 %v2577_v2  ;;  %v3695_v2 = vadd.s32 %v3602_v45, %v974_v49  ;;  %v1141_v49 = vld [vmem:[#allocation11 + $0x1d8] sm:$0xff] }
 0x1f1   : > { %v2754_v22 = vadd.f32 %v854_v17, %v3608_v47  ;;  %2276 = vmatprep.mubr.msk.f32.mxu1 %vm1003_vm3, %v3641_v11  ;;  %v1128_v17 = vld [vmem:[#allocation11 + $0x170] sm:$0xff] }
 0x1f2   : > { %2277 = vmatmul.mubr.msk.f32.gmra.mrb[2].mxu1 %vm1003_vm3, %v3631_v8  ;;  %v3662_v30 = vmax.f32 %v2753_v16, 0.0  ;;  %v1124_v16 = vld [vmem:[#allocation11 + $0x150] sm:$0xff]  ;;  %vm1007_vm7 = vcmp.lt.s32.totalorder %v3695_v2, 500 }
 0x1f3   : > { %v3660_v27 = vmax.f32 %v2754_v22, 0.0  ;;  %2580 = vmatpush1.bf16.msra.mxu1 %v2579_v13  ;;  %v858_v28 = vpop.f32.mrb[6].mxu0  ;;  %v2593_v13 = vpack.c.bf16 %v1129_v1, %v1125_v0 }
 0x1f4   : > { %v2755_v31 = vadd.f32 %v858_v28, %v3605_v46  ;;  %v860_v32 = vpop.f32.mrb[7].mxu0  ;;  %2582 = vmatprep.subr.bf16.mxu1 %v2581_v18 }
 0x1f5   : > { %v2756_v36 = vadd.f32 %v860_v32, %v3608_v47  ;;  %2278 = vmatprep.mubr.msk.f32.mxu1 %vm1004_vm4, %v3660_v27 }
 0x1f6   : > { %v3669_v39 = vmax.f32 %v2755_v31, 0.0  ;;  %2279 = vmatmul.mubr.msk.f32.gmra.mrb[4].mxu1 %vm1004_vm4, %v3662_v30  ;;  %v1180_v31 = vld [vmem:[#allocation11 + $0x310] sm:$0xff] }
 0x1f7   : > { %v3679_v50 = vmax.f32 %v2756_v36, 0.0  ;;  %2584 = vmatpush1.bf16.msra.mxu1 %v2583_v29  ;;  %v864_v51 = vpop.f32.mrb[8].mxu0  ;;  %v2595_v29 = vpack.c.bf16 %v1128_v17, %v1124_v16  ;;  %v1136_v36 = vld [vmem:[#allocation11 + $0x1b0] sm:$0xff]  ;;  %v978_v17 = vadd.s32 72, %v3590_v41 }
 0x1f8   : > { %v2757_v54 = vadd.f32 %v864_v51, %v3605_v46  ;;  %v866_v55 = vpop.f32.mrb[9].mxu0  ;;  %2586 = vmatprep.subr.bf16.mxu1 %v2585_v33  ;;  %v1145_v51 = vld [vmem:[#allocation11 + $0x1f8] sm:$0xff]  ;;  %v2599_v57 = vpack.c.bf16 %v1136_v36, %v1132_v35  ;;  %v4588_v48 = vpack.c.bf16 %v3669_v39, %v3662_v30 }
 0x1f9   : > { %v2758_v62 = vadd.f32 %v866_v55, %v3608_v47  ;;  %2280 = vmatprep.mubr.msk.f32.mxu1 %vm1005_vm5, %v3679_v50  ;;  %v2601_v1 = vpack.c.bf16 %v1145_v51, %v1141_v49  ;;  %v1161_v49 = vld [vmem:[#allocation11 + $0x278] sm:$0xff]  ;;  %v3771_v51 = vadd.s32 %v3602_v45, %v978_v17 }
 0x1fa   : > { %2281 = vmatmul.mubr.msk.f32.gmra.mrb[6].mxu1 %vm1005_vm5, %v3669_v39  ;;  %v3700_v7 = vmax.f32 %v2757_v54, 0.0  ;;  %v977_v54 = vadd.s32 64, %v3590_v41  ;;  %v1165_v17 = vld [vmem:[#allocation11 + $0x298] sm:$0xff] }
 0x1fb   : > { %v3698_v4 = vmax.f32 %v2758_v62, 0.0  ;;  %2588 = vmatpush1.bf16.msra.mxu1 %v2587_v52  ;;  %v870_v5 = vpop.f32.mrb[10].mxu0  ;;  %v3733_v52 = vadd.s32 %v3602_v45, %v976_v24  ;;  %vm1011_vm11 = vcmp.lt.s32.totalorder %v3771_v51, 500  ;;  %v1176_v24 = vld [vmem:[#allocation11 + $0x2f0] sm:$0xff] }
 0x1fc   : > { %v2759_v10 = vadd.f32 %v870_v5, %v3605_v46  ;;  %v872_v12 = vpop.f32.mrb[11].mxu0  ;;  %2590 = vmatprep.subr.bf16.mxu1 %v2589_v56  ;;  %v1144_v5 = vld [vmem:[#allocation11 + $0x1f0] sm:$0xff]  ;;  %v3752_v16 = vadd.s32 %v3602_v45, %v977_v54  ;;  %v979_v54 = vadd.s32 80, %v3590_v41 }
 0x1fd   : > { %v2760_v18 = vadd.f32 %v872_v12, %v3608_v47  ;;  %2282 = vmatprep.mubr.msk.f32.mxu1 %vm1006_vm6, %v3698_v4  ;;  %v1153_v12 = vld [vmem:[#allocation11 + $0x238] sm:$0xff]  ;;  %vm1009_vm9 = vcmp.lt.s32.totalorder %v3733_v52, 500  ;;  %v2603_v20 = vpack.c.bf16 %v1144_v5, %v1140_v3 }
 0x1fe   : > { %v3707_v22 = vmax.f32 %v2759_v10, 0.0  ;;  %2283 = vmatmul.mubr.msk.f32.gmra.mrb[8].mxu1 %vm1006_vm6, %v3700_v7  ;;  %v1149_v10 = vld [vmem:[#allocation11 + $0x218] sm:$0xff]  ;;  %vm1010_vm10 = vcmp.lt.s32.totalorder %v3752_v16, 500 }
 0x1ff   : > { %v3717_v26 = vmax.f32 %v2760_v18, 0.0  ;;  %2592 = vmatpush1.bf16.msra.mxu1 %v2591_v6  ;;  %v876_v28 = vpop.f32.mrb[12].mxu0 }
 0x200   : > { %v2761_v32 = vadd.f32 %v876_v28, %v3605_v46  ;;  %v878_v33 = vpop.f32.mrb[13].mxu0  ;;  %2594 = vmatprep.subr.bf16.mxu1 %v2593_v13  ;;  %v4590_v58 = vpack.c.bf16 %v3707_v22, %v3700_v7 }
 0x201   : > { %v2762_v38 = vadd.f32 %v878_v33, %v3608_v47  ;;  %2284 = vmatprep.mubr.msk.f32.mxu1 %vm1007_vm7, %v3717_v26  ;;  %v1148_v33 = vld [vmem:[#allocation11 + $0x210] sm:$0xff] }
 0x202   : > { %2285 = vmatmul.mubr.msk.f32.gmra.mrb[10].mxu1 %vm1007_vm7, %v3707_v22  ;;  %v3738_v59 = vmax.f32 %v2761_v32, 0.0  ;;  %v2605_v32 = vpack.c.bf16 %v1153_v12, %v1149_v10  ;;  %v1160_v10 = vld [vmem:[#allocation11 + $0x270] sm:$0xff] }
 0x203   : > { %v3736_v55 = vmax.f32 %v2762_v38, 0.0  ;;  %2596 = vmatpush1.bf16.msra.mxu1 %v2595_v29  ;;  %v882_v56 = vpop.f32.mrb[14].mxu0  ;;  %v1157_v38 = vld [vmem:[#allocation11 + $0x258] sm:$0xff] }
 0x204   : > { %v2763_v62 = vadd.f32 %v882_v56, %v3605_v46  ;;  %v884_v0 = vpop.f32.mrb[15].mxu0  ;;  %2598 = vmatprep.subr.bf16.mxu1 %v2597_v34  ;;  %v1152_v34 = vld [vmem:[#allocation11 + $0x230] sm:$0xff]  ;;  %v2609_v5 = vpack.c.bf16 %v1161_v49, %v1157_v38 }
 0x205   : > { %v2764_v6 = vadd.f32 %v884_v0, %v3608_v47  ;;  %2286 = vmatprep.mubr.msk.f32.mxu1 %vm1008_vm8, %v3736_v55 }
 0x206   : > { %v3745_v13 = vmax.f32 %v2763_v62, 0.0  ;;  %2287 = vmatmul.mubr.msk.f32.gmra.mrb[12].mxu1 %vm1008_vm8, %v3738_v59  ;;  %v2607_v62 = vpack.c.bf16 %v1152_v34, %v1148_v33 }
 0x207   : > { %v3755_v18 = vmax.f32 %v2764_v6, 0.0  ;;  %2600 = vmatpush1.bf16.msra.mxu1 %v2599_v57  ;;  %v888_v19 = vpop.f32.mrb[16].mxu0  ;;  %v1156_v6 = vld [vmem:[#allocation11 + $0x250] sm:$0xff] }
 0x208   : > { %v2765_v28 = vadd.f32 %v888_v19, %v3605_v46  ;;  %v890_v29 = vpop.f32.mrb[17].mxu0  ;;  %2602 = vmatprep.subr.bf16.mxu1 %v2601_v1  ;;  %v1169_v19 = vld [vmem:[#allocation11 + $0x2b8] sm:$0xff]  ;;  %v2611_v34 = vpack.c.bf16 %v1160_v10, %v1156_v6  ;;  %v981_v10 = vadd.s32 96, %v3590_v41  ;;  %v4592_v9 = vpack.c.bf16 %v3745_v13, %v3738_v59 }
 0x209   : > { %v2766_v36 = vadd.f32 %v890_v29, %v3608_v47  ;;  %2288 = vmatprep.mubr.msk.f32.mxu1 %vm1009_vm9, %v3755_v18  ;;  %v980_v29 = vadd.s32 88, %v3590_v41  ;;  %v1177_v6 = vld [vmem:[#allocation11 + $0x2f8] sm:$0xff] }
 0x20a   : > { %2289 = vmatmul.mubr.msk.f32.gmra.mrb[14].mxu1 %vm1009_vm9, %v3745_v13  ;;  %v3776_v0 = vmax.f32 %v2765_v28, 0.0  ;;  %v3790_v28 = vadd.s32 %v3602_v45, %v979_v54  ;;  %v1172_v54 = vld [vmem:[#allocation11 + $0x2d0] sm:$0xff] }
 0x20b   : > { %v3774_v56 = vmax.f32 %v2766_v36, 0.0  ;;  %2604 = vmatpush1.bf16.msra.mxu1 %v2603_v20  ;;  %v894_v57 = vpop.f32.mrb[18].mxu0 }
 0x20c   : > { %v2767_v1 = vadd.f32 %v894_v57, %v3605_v46  ;;  %v896_v3 = vpop.f32.mrb[19].mxu0  ;;  %2606 = vmatprep.subr.bf16.mxu1 %v2605_v32  ;;  %v2613_v57 = vpack.c.bf16 %v1169_v19, %v1165_v17  ;;  %vm1012_vm12 = vcmp.lt.s32.totalorder %v3790_v28, 500 }
 0x20d   : > { %v2768_v12 = vadd.f32 %v896_v3, %v3608_v47  ;;  %2290 = vmatprep.mubr.msk.f32.mxu1 %vm1010_vm10, %v3774_v56  ;;  %v1168_v3 = vld [vmem:[#allocation11 + $0x2b0] sm:$0xff] }
 0x20e   : > { %v3783_v20 = vmax.f32 %v2767_v1, 0.0  ;;  %2291 = vmatmul.mubr.msk.f32.gmra.mrb[16].mxu1 %vm1010_vm10, %v3776_v0  ;;  %v1164_v1 = vld [vmem:[#allocation11 + $0x290] sm:$0xff] }
 0x20f   : > { %v3793_v32 = vmax.f32 %v2768_v12, 0.0  ;;  %2608 = vmatpush1.bf16.msra.mxu1 %v2607_v62  ;;  %v900_v33 = vpop.f32.mrb[20].mxu0  ;;  %v1173_v62 = vld [vmem:[#allocation11 + $0x2d8] sm:$0xff]  ;;  %v2615_v19 = vpack.c.bf16 %v1168_v3, %v1164_v1  ;;  %v2619_v3 = vpack.c.bf16 %v1176_v24, %v1172_v54  ;;  %v983_v54 = vadd.s32 112, %v3590_v41 }
 0x210   : > { %v2769_v38 = vadd.f32 %v900_v33, %v3605_v46  ;;  %v902_v49 = vpop.f32.mrb[21].mxu0  ;;  %2610 = vmatprep.subr.bf16.mxu1 %v2609_v5  ;;  %v3809_v5 = vadd.s32 %v3602_v45, %v980_v29  ;;  %v2617_v36 = vpack.c.bf16 %v1177_v6, %v1173_v62  ;;  %v1185_v29 = vld [vmem:[#allocation11 + $0x338] sm:$0xff]  ;;  %v4594_v25 = vpack.c.bf16 %v3783_v20, %v3776_v0 }
 0x211   : > { %v2770_v40 = vadd.f32 %v902_v49, %v3608_v47  ;;  %2292 = vmatprep.mubr.msk.f32.mxu1 %vm1011_vm11, %v3793_v32  ;;  %v1189_v24 = vld [vmem:[#allocation11 + $0x358] sm:$0xff] }
 0x212   : > { %2293 = vmatmul.mubr.msk.f32.gmra.mrb[18].mxu1 %vm1011_vm11, %v3783_v20  ;;  %v3814_v33 = vmax.f32 %v2769_v38, 0.0  ;;  %vm1013_vm13 = vcmp.lt.s32.totalorder %v3809_v5, 500  ;;  %v3828_v38 = vadd.s32 %v3602_v45, %v981_v10 }
 0x213   : > { %v3812_v12 = vmax.f32 %v2770_v40, 0.0  ;;  %2612 = vmatpush1.bf16.msra.mxu1 %v2611_v34  ;;  %v906_v17 = vpop.f32.mrb[22].mxu0  ;;  %v1181_v40 = vld [vmem:[#allocation11 + $0x318] sm:$0xff] }
 0x214   : > { %v2771_v49 = vadd.f32 %v906_v17, %v3605_v46  ;;  %v908_v14 = vpop.f32.mrb[23].mxu0  ;;  %2614 = vmatprep.subr.bf16.mxu1 %v2613_v57  ;;  %v982_v57 = vadd.s32 104, %v3590_v41  ;;  %vm1014_vm14 = vcmp.lt.s32.totalorder %v3828_v38, 500  ;;  %v3268_v38 = vmov 0  }
 0x215   : > { %v2772_v35 = vadd.f32 %v908_v14, %v3608_v47  ;;  %2294 = vmatprep.mubr.msk.f32.mxu1 %vm1012_vm12, %v3812_v12  ;;  %2903 = vset.pattern.permute.xlu0 %v3268_v38 }
 0x216   : > { %v3821_v34 = vmax.f32 %v2771_v49, 0.0  ;;  %2295 = vmatmul.mubr.msk.f32.gmra.mrb[20].mxu1 %vm1012_vm12, %v3814_v33  ;;  %v2621_v49 = vpack.c.bf16 %v1185_v29, %v1181_v40  ;;  %v2623_v29 = vpack.c.bf16 %v1184_v37, %v1180_v31  ;;  %v3866_v31 = vadd.s32 %v3602_v45, %v983_v54  ;;  %v1204_v54 = vld [vmem:[#allocation11 + $0x3d0] sm:$0xff]  ;;  %2904 = vset.pattern.permute.xlu1 %v3268_v38 }
 0x217   : > { %v3831_v14 = vmax.f32 %v2772_v35, 0.0  ;;  %2616 = vmatpush1.bf16.msra.mxu1 %v2615_v19  ;;  %v912_v1 = vpop.f32.mrb[24].mxu0  ;;  %v1193_v35 = vld [vmem:[#allocation11 + $0x378] sm:$0xff]  ;;  %v984_v37 = vadd.s32 120, %v3590_v41 }
 0x218   : > { %v2773_v6 = vadd.f32 %v912_v1, %v3605_v46  ;;  %v914_v17 = vpop.f32.mrb[25].mxu0  ;;  %2618 = vmatprep.subr.bf16.mxu1 %v2617_v36  ;;  %v3847_v36 = vadd.s32 %v3602_v45, %v982_v57  ;;  %v2625_v10 = vpack.c.bf16 %v1193_v35, %v1189_v24  ;;  %v1201_v57 = vld [vmem:[#allocation11 + $0x3b8] sm:$0xff]  ;;  %vm4560_vm0 = vcmp.lt.s32.totalorder %v3866_v31, 500 }
 0x219   : > { %v2774_v53 = vadd.f32 %v914_v17, %v3608_v47  ;;  %2296 = vmatprep.mubr.msk.f32.mxu1 %vm1013_vm13, %v3831_v14 }
 0x21a   : > { %2297 = vmatmul.mubr.msk.f32.gmra.mrb[22].mxu1 %vm1013_vm13, %v3821_v34  ;;  %v3852_v1 = vmax.f32 %v2773_v6, 0.0  ;;  %vm4561_vm15 = vcmp.lt.s32.totalorder %v3847_v36, 500 }
 0x21b   : > { %v3850_v19 = vmax.f32 %v2774_v53, 0.0  ;;  %2620 = vmatpush1.bf16.msra.mxu1 %v2619_v3  ;;  %v918_v40 = vpop.f32.mrb[26].mxu0  ;;  %v1197_v53 = vld [vmem:[#allocation11 + $0x398] sm:$0xff] }
 0x21c   : > { %4583 = vst [vmem:[#allocation27_spill] sm:$0xff] %v3852_v1  ;;  %v2775_v17 = vadd.f32 %v918_v40, %v3605_v46  ;;  %v920_v62 = vpop.f32.mrb[27].mxu0  ;;  %2622 = vmatprep.subr.bf16.mxu1 %v2621_v49  ;;  %v2627_v49 = vpack.c.bf16 %v1192_v15, %v1188_v61  ;;  %v1205_v15 = vld [vmem:[#allocation11 + $0x3d8] sm:$0xff]  ;;  %v3885_v61 = vadd.s32 %v3602_v45, %v984_v37 }
 0x21d   : > { %v2776_v21 = vadd.f32 %v920_v62, %v3608_v47  ;;  %2298 = vmatprep.mubr.msk.f32.mxu1 %vm1014_vm14, %v3850_v19 }
 0x21e   : > { %v3859_v3 = vmax.f32 %v2775_v17, 0.0  ;;  %2299 = vmatmul.mubr.msk.f32.gmra.mrb[24].mxu1 %vm1014_vm14, %v3852_v1  ;;  %v2629_v17 = vpack.c.bf16 %v1201_v57, %v1197_v53  ;;  %v2631_v53 = vpack.c.bf16 %v1200_v44, %v1196_v42  ;;  %v1208_v1 = vld [vmem:[#allocation11 + $0x3f0] sm:$0xff]  ;;  %vm4562_vm1 = vcmp.lt.s32.totalorder %v3885_v61, 500 }
 0x21f   : > { %v3869_v62 = vmax.f32 %v2776_v21, 0.0  ;;  %2624 = vmatpush1.bf16.msra.mxu1 %v2623_v29  ;;  %v924_v6 = vpop.f32.mrb[28].mxu0  ;;  %v1209_v21 = vld [vmem:[#allocation11 + $0x3f8] sm:$0xff]  ;;  %v2635_v44 = vpack.c.bf16 %v1208_v1, %v1204_v54  ;;  %v4585_v1 = vpack.c.bf16 %v3641_v11, %v3622_v60 }
 0x220   : > { %4584 = vst [vmem:[#allocation28_spill] sm:$0xff] %v3859_v3  ;;  %v2777_v35 = vadd.f32 %v924_v6, %v3605_v46  ;;  %v926_v40 = vpop.f32.mrb[29].mxu0  ;;  %2626 = vmatprep.subr.bf16.mxu1 %v2625_v10  ;;  %v2633_v24 = vpack.c.bf16 %v1209_v21, %v1205_v15  ;;  %v4612_v15 = vld [vmem:[#allocation25_spill] sm:$0xff] }
 0x221   : > { %v2778_v41 = vadd.f32 %v926_v40, %v3608_v47  ;;  %2300 = vmatprep.mubr.msk.f32.mxu1 %vm4561_vm15, %v3869_v62 }
 0x222   : > { %2301 = vmatmul.mubr.msk.f32.gmra.mrb[26].mxu1 %vm4561_vm15, %v3859_v3  ;;  %v3889_v57 = vmax.f32 %v2777_v35, 0.0  ;;  %vm2676_vm15 = vmpackc.low %vm1005_vm5, %vm1004_vm4  ;;  %v1210_v35 = vld [vmem:[%s4527_s4] sm:$0xf] }
 0x223   : > { %v3887_v10 = vmax.f32 %v2778_v41, 0.0  ;;  %2628 = vmatpush1.bf16.msra.mxu1 %v2627_v49  ;;  %v930_v29 = vpop.f32.mrb[30].mxu0  ;;  %v4122_v21 = vrot.slane %v1210_v35, %v4612_v15 }
 0x224   : > { %v2779_v6 = vadd.f32 %v930_v29, %v3605_v46  ;;  %v932_v40 = vpop.f32.mrb[31].mxu0  ;;  %2630 = vmatprep.subr.bf16.mxu1 %v2629_v17 }
 0x225   : > { %v2780_v3 = vadd.f32 %v932_v40, %v3608_v47  ;;  %2302 = vmatprep.mubr.msk.f32.mxu1 %vm4560_vm0, %v3887_v10 }
 0x226   : > { %v3896_v41 = vmax.f32 %v2779_v6, 0.0  ;;  %2303 = vmatmul.mubr.msk.f32.gmra.mrb[28].mxu1 %vm4560_vm0, %v3889_v57  ;;  %vm2670_vm0 = vmpackc.low %vm1003_vm3, %vm1002_vm2 }
 0x227   : > { %v3902_v42 = vmax.f32 %v2780_v3, 0.0  ;;  %2632 = vmatpush1.bf16.msra.mxu1 %v2631_v53  ;;  %v4586_v3 = vpack.c.bf16 %v3631_v8, %v3624_v63  ;;  %v4601_v43 = vld [vmem:[#allocation28_spill] sm:$0xff] }
 0x228   : > { %v2714_v46 = vpack.c.bf16 %v3896_v41, %v3889_v57  ;;  %2634 = vmatprep.subr.bf16.mxu1 %v2633_v24 }
 0x229   : > { %v2711_v47 = vpack.c.bf16 %v3902_v42, %v3887_v10  ;;  %2304 = vmatprep.mubr.msk.f32.mxu1 %vm4562_vm1, %v3902_v42 }
 0x22a   : > { %2305 = vmatmul.mubr.msk.f32.gmra.mrb[30].mxu1 %vm4562_vm1, %v3896_v41  ;;  %vm2682_vm1 = vmpackc.low %vm1007_vm7, %vm1006_vm6 }
 0x22b   : > { %2636 = vmatpush1.bf16.msra.mxu1 %v2635_v44  ;;  %2306 = vmatprep.mubr.msk.f32.mxu1 %vm1002_vm2, %v3622_v60  ;;  %v4587_v60 = vpack.c.bf16 %v3679_v50, %v3660_v27  ;;  %v4613_v44 = vld [vmem:[#allocation24_spill] sm:$0xff] }
 0x22c   : > { %2671 = vmatprep.subr.msk.bf16.mxu1 %vm2670_vm0, %v4585_v1  ;;  %v1226_v1 = vsub.s32 3, %v4613_v44 }
 0x22e   : > { %2307 = vmatmul.mubr.msk.f32.vlgmr.msra.gmra.mrb[32].mxu1 %vm1002_vm2, %v3624_v63  ;;  %v4589_v63 = vpack.c.bf16 %v3717_v26, %v3698_v4  ;;  %vm2688_vm2 = vmpackc.low %vm1009_vm9, %vm1008_vm8 }
 0x22f   : > { %2674 = vmatpush1.bf16.msk.msra.mxu1 %vm2670_vm0, %v4586_v3  ;;  %2308 = vmatprep.mubr.msk.f32.mxu1 %vm1003_vm3, %v3641_v11  ;;  %v4593_v11 = vpack.c.bf16 %v3793_v32, %v3774_v56  ;;  %vm4600_vm0 = vcmp.lt.s32.totalorder %v3885_v61, 500 }
 0x230   : > { %2677 = vmatprep.subr.msk.bf16.mxu1 %vm2676_vm15, %v4587_v60 }
 0x232   : > { %2309 = vmatmul.mubr.msk.f32.gmra.mrb[34].mxu1 %vm1003_vm3, %v3631_v8  ;;  %v4591_v8 = vpack.c.bf16 %v3755_v18, %v3736_v55  ;;  %vm2694_vm3 = vmpackc.low %vm1011_vm11, %vm1010_vm10 }
 0x233   : > { %2680 = vmatpush1.bf16.msk.msra.mxu1 %vm2676_vm15, %v4588_v48  ;;  %2310 = vmatprep.mubr.msk.f32.mxu1 %vm1004_vm4, %v3660_v27  ;;  %v4595_v27 = vpack.c.bf16 %v3831_v14, %v3812_v12 }
 0x234   : > { %2683 = vmatprep.subr.msk.bf16.mxu1 %vm2682_vm1, %v4589_v63 }
 0x236   : > { %2311 = vmatmul.mubr.msk.f32.gmra.mrb[36].mxu1 %vm1004_vm4, %v3662_v30  ;;  %vm2700_vm4 = vmpackc.low %vm1013_vm13, %vm1012_vm12  ;;  %v4597_v30 = vpack.c.bf16 %v3821_v34, %v3814_v33 }
 0x237   : > { %2686 = vmatpush1.bf16.msk.msra.mxu1 %vm2682_vm1, %v4590_v58  ;;  %2312 = vmatprep.mubr.msk.f32.mxu1 %vm1005_vm5, %v3679_v50  ;;  %v4602_v50 = vld [vmem:[#allocation27_spill] sm:$0xff] }
 0x238   : > { %2689 = vmatprep.subr.msk.bf16.mxu1 %vm2688_vm2, %v4591_v8  ;;  %v4603_v2 = vpack.c.bf16 %v4601_v43, %v4602_v50 }
 0x23a   : > { %2313 = vmatmul.mubr.msk.f32.gmra.mrb[38].mxu1 %vm1005_vm5, %v3669_v39  ;;  %vm4596_vm5 = vcmp.lt.s32.totalorder %v3847_v36, 500  ;;  %v4598_v39 = vpack.c.bf16 %v3869_v62, %v3850_v19 }
 0x23b   : > { %2692 = vmatpush1.bf16.msk.msra.mxu1 %vm2688_vm2, %v4592_v9  ;;  %2314 = vmatprep.mubr.msk.f32.mxu1 %vm1006_vm6, %v3698_v4  ;;  %vm2706_vm15 = vmpackc.low %vm4596_vm5, %vm1014_vm14  ;;  %v4610_v4 = vmov 0.0   ;;  %vm1871_vm2 = vcmask 0  }
 0x23c   : > { %2695 = vmatprep.subr.msk.bf16.mxu1 %vm2694_vm3, %v4593_v11  ;;  %v4152_v11 = vrot.slane %v1210_v35, %v1226_v1 }
 0x23e   : > { %2315 = vmatmul.mubr.msk.f32.gmra.mrb[40].mxu1 %vm1006_vm6, %v3700_v7  ;;  %vm4599_vm6 = vcmp.lt.s32.totalorder %v3866_v31, 500 }
 0x23f   : > { %2698 = vmatpush1.bf16.msk.msra.mxu1 %vm2694_vm3, %v4594_v25  ;;  %2316 = vmatprep.mubr.msk.f32.mxu1 %vm1007_vm7, %v3717_v26  ;;  %vm2712_vm1 = vmpackc.low %vm4600_vm0, %vm4599_vm6 }
 0x240   : > { %2701 = vmatprep.subr.msk.bf16.mxu1 %vm2700_vm4, %v4595_v27 }
 0x242   : > { %2317 = vmatmul.mubr.msk.f32.gmra.mrb[42].mxu1 %vm1007_vm7, %v3707_v22  ;;  %vm4604_vm7 = vmmov %vm4596_vm5 }
 0x243   : > { %2704 = vmatpush1.bf16.msk.msra.mxu1 %vm2700_vm4, %v4597_v30  ;;  %2318 = vmatprep.mubr.msk.f32.mxu1 %vm1008_vm8, %v3736_v55  ;;  %vm2112_vm4 = vcmask (!%p2370_p9), 24576  }
 0x244   : > { %2707 = vmatprep.subr.msk.bf16.mxu1 %vm2706_vm15, %v4598_v39 }
 0x246   : > { %2319 = vmatmul.mubr.msk.f32.gmra.mrb[44].mxu1 %vm1008_vm8, %v3738_v59  ;;  %vm4605_vm8 = vmmov %vm4596_vm5 }
 0x247   : > { %2710 = vmatpush1.bf16.msk.msra.mxu1 %vm2706_vm15, %v4603_v2  ;;  %2320 = vmatprep.mubr.msk.f32.mxu1 %vm1009_vm9, %v3755_v18 }
 0x248   : > { %2713 = vmatprep.subr.msk.bf16.mxu1 %vm2712_vm1, %v2711_v47 }
 0x24a   : > { %2321 = vmatmul.mubr.msk.f32.gmra.mrb[46].mxu1 %vm1009_vm9, %v3745_v13  ;;  %vm4606_vm9 = vmmov %vm4599_vm6 }
 0x24b   : > { %2716 = vmatpush1.bf16.msk.msra.mxu1 %vm2712_vm1, %v2714_v46  ;;  %2322 = vmatprep.mubr.msk.f32.mxu1 %vm1010_vm10, %v3774_v56  ;;  %v1222_v46 = vsub.s32 2, %v4613_v44 }
 0x24d   : > { %v4149_v8 = vrot.slane %v1210_v35, %v1222_v46 }
 0x24e   : > { %2323 = vmatmul.mubr.msk.f32.gmra.mrb[48].mxu1 %vm1010_vm10, %v3776_v0  ;;  %vm4607_vm10 = vmmov %vm4599_vm6  ;;  %v4088_v0 = vld [vmem:[%s4528_s5] sm:$0x3] }
 0x24f   : > { %2324 = vmatprep.mubr.msk.f32.mxu1 %vm1011_vm11, %v3793_v32 }
 0x252   : > { %2325 = vmatmul.mubr.msk.f32.gmra.mrb[50].mxu1 %vm1011_vm11, %v3783_v20  ;;  %vm4608_vm11 = vmmov %vm4600_vm0  ;;  %v4611_v20 = vld [vmem:[#allocation26_spill] sm:$0xff] }
 0x253   : > { %2326 = vmatprep.mubr.msk.f32.mxu1 %vm1012_vm12, %v3812_v12  ;;  %v1765_v28 = vrot.slane %v4088_v0, %v4611_v20  ;;  %v4125_v61 = vrot.slane %v1210_v35, %v4611_v20 }
 0x255   : > { %1832 = vmatprep.mubr.f32.mxu0 %v1765_v28 }
 0x256   : > { %2327 = vmatmul.mubr.msk.f32.gmra.mrb[52].mxu1 %vm1012_vm12, %v3814_v33  ;;  %vm4609_vm12 = vmmov %vm4600_vm0 }
 0x257   : > { %2328 = vmatprep.mubr.msk.f32.mxu1 %vm1013_vm13, %v3831_v14 }
 0x25a   : > { %2329 = vmatmul.mubr.msk.f32.gmra.mrb[54].mxu1 %vm1013_vm13, %v3821_v34  ;;  %v1747_v34 = vld [vmem:[#allocation5] sm:$0x1] }
 0x25b   : > { %2330 = vmatprep.mubr.msk.f32.mxu1 %vm1014_vm14, %v3850_v19  ;;  %1750 = vperm.xlu0 %2903, %v1747_v34  }
 0x25e   : > { %2331 = vmatmul.mubr.msk.f32.gmra.mrb[56].mxu1 %vm1014_vm14, %v4602_v50  ;;  %vm1845_vm14 = vcmask 1040384  }
 0x25f   : > { %2332 = vmatprep.mubr.msk.f32.mxu1 %vm4604_vm7, %v3869_v62 }
 0x262   : > { %2333 = vmatmul.mubr.msk.f32.gmra.mrb[58].mxu1 %vm4605_vm8, %v4601_v43 }
 0x263   : > { %2334 = vmatprep.mubr.msk.f32.mxu1 %vm4606_vm9, %v3887_v10 }
 0x266   : > { %2335 = vmatmul.mubr.msk.f32.gmra.mrb[60].mxu1 %vm4607_vm10, %v3889_v57 }
 0x267   : > { %2336 = vmatprep.mubr.msk.f32.mxu1 %vm4608_vm11, %v3902_v42 }
 0x26a   : > { %2337 = vmatmul.mubr.msk.f32.gmra.mrb[62].mxu1 %vm4609_vm12, %v3896_v41 }
 0x26b   : > { %1948 = vmatprep.mubr.f32.mxu1 %v4610_v4 }
 0x2c1   : > { %v1298_v7 = vpop.f32.mrb[0].mxu1 }
 0x2c2   : > { %v1300_v22 = vpop.f32.mrb[1].mxu1  ;;  %v1299_v53 = vadd.f32 %v1298_v7, %v4122_v21 }
 0x2c3   : > { %v1301_v57 = vadd.f32 %v1300_v22, %v4125_v61 }
 0x2c4   : > { %2905 = vtanh.f32 %v1299_v53 }
 0x2c5   : > { %v1304_v23 = vpop.f32.mrb[2].mxu1  ;;  %2907 = vtanh.f32 %v1301_v57 }
 0x2c6   : > { %v1306_v26 = vpop.f32.mrb[3].mxu1  ;;  %v1305_v6 = vadd.f32 %v1304_v23, %v4122_v21 }
 0x2c7   : > { %v1307_v41 = vadd.f32 %v1306_v26, %v4125_v61 }
 0x2c8   : > { %2909 = vtanh.f32 %v1305_v6 }
 0x2c9   : > { %v1310_v52 = vpop.f32.mrb[4].mxu1  ;;  %2911 = vtanh.f32 %v1307_v41 }
 0x2ca   : > { %v1312_v55 = vpop.f32.mrb[5].mxu1  ;;  %v1311_v47 = vadd.f32 %v1310_v52, %v4122_v21 }
 0x2cb   : > { %v1313_v3 = vadd.f32 %v1312_v55, %v4125_v61 }
 0x2cc   : > { %2913 = vtanh.f32 %v1311_v47 }
 0x2cd   : > { %v1316_v59 = vpop.f32.mrb[6].mxu1  ;;  %2915 = vtanh.f32 %v1313_v3 }
 0x2ce   : > { %v1318_v13 = vpop.f32.mrb[7].mxu1  ;;  %v1317_v60 = vadd.f32 %v1316_v59, %v4122_v21  ;;  %v4159_v7 = vpop.eup %2905 }
 0x2cf   : > { %v1319_v63 = vadd.f32 %v1318_v13, %v4125_v61  ;;  %v4162_v52 = vpop.eup %2907 }
 0x2d0   : > { %2917 = vtanh.f32 %v1317_v60 }
 0x2d1   : > { %v1322_v16 = vpop.f32.mrb[8].mxu1  ;;  %2919 = vtanh.f32 %v1319_v63 }
 0x2d2   : > { %v1324_v18 = vpop.f32.mrb[9].mxu1  ;;  %v1323_v9 = vadd.f32 %v1322_v16, %v4122_v21  ;;  %v4165_v13 = vpop.eup %2909 }
 0x2d3   : > { %v1325_v25 = vadd.f32 %v1324_v18, %v4125_v61  ;;  %v4168_v18 = vpop.eup %2911 }
 0x2d4   : > { %2921 = vtanh.f32 %v1323_v9 }
 0x2d5   : > { %v1328_v51 = vpop.f32.mrb[10].mxu1  ;;  %2923 = vtanh.f32 %v1325_v25 }
 0x2d6   : > { %v1330_v56 = vpop.f32.mrb[11].mxu1  ;;  %v1329_v27 = vadd.f32 %v1328_v51, %v4122_v21  ;;  %v4172_v20 = vpop.eup %2913 }
 0x2d7   : > { %v1331_v2 = vadd.f32 %v1330_v56, %v4125_v61  ;;  %v4176_v38 = vpop.eup %2915 }
 0x2d8   : > { %2925 = vtanh.f32 %v1329_v27 }
 0x2d9   : > { %v1334_v32 = vpop.f32.mrb[12].mxu1 }
 0x2da   : > { %v4092_v5 = vpop.f32.mrb[13].mxu1  ;;  %v1335_v22 = vadd.f32 %v1334_v32, %v4122_v21  ;;  %v4179_v57 = vpop.eup %2917 }
 0x2db   : > { %v1337_v51 = vadd.f32 %v4092_v5, %v4125_v61  ;;  %v4182_v6 = vpop.eup %2919 }
 0x2dd   : > { %v4094_v12 = vpop.f32.mrb[14].mxu1 }
 0x2de   : > { %v4096_v33 = vpop.f32.mrb[15].mxu1  ;;  %v1341_v28 = vadd.f32 %v4094_v12, %v4122_v21  ;;  %v4186_v46 = vpop.eup %2921 }
 0x2df   : > { %v1343_v41 = vadd.f32 %v4096_v33, %v4125_v61  ;;  %v4190_v60 = vpop.eup %2923 }
 0x2e1   : > { %v4098_v14 = vpop.f32.mrb[16].mxu1 }
 0x2e2   : > { %v4100_v36 = vpop.f32.mrb[17].mxu1  ;;  %v1347_v47 = vadd.f32 %v4098_v14, %v4122_v21  ;;  %v4193_v25 = vpop.eup %2925 }
 0x2e5   : > { %v4102_v19 = vpop.f32.mrb[18].mxu1 }
 0x2e6   : > { %v4104_v31 = vpop.f32.mrb[19].mxu1 }
 0x2e9   : > { %v4106_v37 = vpop.f32.mrb[20].mxu1 }
 0x2ea   : > { %v4108_v62 = vpop.f32.mrb[21].mxu1 }
 0x2ed   : > { %v4110_v49 = vpop.f32.mrb[22].mxu1 }
 0x2ee   : > { %v4112_v24 = vpop.f32.mrb[23].mxu1 }
 0x2f1   : > { %v4117_v17 = vpop.f32.mrb[24].mxu1 }
 0x2f2   : > { %v4119_v54 = vpop.f32.mrb[25].mxu1 }
 0x2f5   : > { %v4127_v10 = vpop.f32.mrb[26].mxu1 }
 0x2f6   : > { %v4129_v29 = vpop.f32.mrb[27].mxu1 }
 0x2f9   : > { %v4134_v40 = vpop.f32.mrb[28].mxu1 }
 0x2fa   : > { %v4137_v42 = vpop.f32.mrb[29].mxu1 }
 0x2fd   : > { %v4144_v48 = vpop.f32.mrb[30].mxu1 }
 0x2fe   : > { %v4147_v58 = vpop.f32.mrb[31].mxu1 }
 0x301   : > { %v1459_v30 = vpop.f32.mrb[32].mxu1 }
 0x302   : > { %v1460_v39 = vadd.f32 %v1459_v30, %v4149_v8  ;;  %v1461_v43 = vpop.f32.mrb[33].mxu1  ;;  %v1349_v30 = vadd.f32 %v4100_v36, %v4125_v61 }
 0x303   : > { %v1462_v50 = vadd.f32 %v1461_v43, %v4152_v11 }
 0x304   : > { %v1586_v4 = vmul.f32 0.5, %v1460_v39 }
 0x305   : > { %v1587_v23 = vmul.f32 0.5, %v1462_v50  ;;  %v1465_v26 = vpop.f32.mrb[34].mxu1 }
 0x306   : > { %2927 = vtanh.f32 %v1586_v4  ;;  %v1466_v55 = vadd.f32 %v1465_v26, %v4149_v8  ;;  %v1467_v59 = vpop.f32.mrb[35].mxu1 }
 0x307   : > { %2929 = vtanh.f32 %v1587_v23  ;;  %v1468_v16 = vadd.f32 %v1467_v59, %v4152_v11 }
 0x308   : > { %2931 = vtanh.f32 %v1331_v2  ;;  %v1588_v56 = vmul.f32 0.5, %v1466_v55 }
 0x309   : > { %2933 = vtanh.f32 %v1335_v22  ;;  %v1589_v32 = vmul.f32 0.5, %v1468_v16  ;;  %v1471_v34 = vpop.f32.mrb[36].mxu1 }
 0x30a   : > { %2935 = vtanh.f32 %v1588_v56  ;;  %v1472_v35 = vadd.f32 %v1471_v34, %v4149_v8  ;;  %v1473_v53 = vpop.f32.mrb[37].mxu1  ;;  %v1355_v34 = vadd.f32 %v4104_v31, %v4125_v61 }
 0x30b   : > { %2937 = vtanh.f32 %v1589_v32  ;;  %v1474_v5 = vadd.f32 %v1473_v53, %v4152_v11 }
 0x30c   : > { %2939 = vtanh.f32 %v1337_v51  ;;  %v1590_v12 = vmul.f32 0.5, %v1472_v35  ;;  %v1353_v51 = vadd.f32 %v4102_v19, %v4122_v21 }
 0x30d   : > { %2941 = vtanh.f32 %v1341_v28  ;;  %v1591_v1 = vmul.f32 0.5, %v1474_v5  ;;  %v1477_v3 = vpop.f32.mrb[38].mxu1 }
 0x30e   : > { %2943 = vtanh.f32 %v1590_v12  ;;  %v1478_v63 = vadd.f32 %v1477_v3, %v4149_v8  ;;  %v1479_v9 = vpop.f32.mrb[39].mxu1 }
 0x30f   : > { %2945 = vtanh.f32 %v1591_v1  ;;  %v1480_v33 = vadd.f32 %v1479_v9, %v4152_v11 }
 0x310   : > { %v2928_v27 = vpop.eup %2927  ;;  %2947 = vtanh.f32 %v1343_v41  ;;  %v1592_v39 = vmul.f32 0.5, %v1478_v63 }
 0x311   : > { %v2930_v14 = vpop.eup %2929  ;;  %2949 = vtanh.f32 %v1347_v47  ;;  %v1650_v43 = vmul.f32 0.5, %v2928_v27  ;;  %v1593_v50 = vmul.f32 0.5, %v1480_v33  ;;  %v1483_v2 = vpop.f32.mrb[40].mxu1 }
 0x312   : > { %v4198_v4 = vpop.eup %2931  ;;  %v1651_v22 = vmul.f32 0.5, %v2930_v14  ;;  %2951 = vtanh.f32 %v1592_v39  ;;  %v1484_v23 = vadd.f32 %v1483_v2, %v4149_v8  ;;  %v1485_v26 = vpop.f32.mrb[41].mxu1 }
 0x313   : > { %v4201_v55 = vpop.eup %2933  ;;  %v1682_v59 = vadd.f32 0.5, %v1650_v43  ;;  %2953 = vtanh.f32 %v1593_v50  ;;  %v1486_v16 = vadd.f32 %v1485_v26, %v4152_v11 }
 0x314   : > { %v2936_v36 = vpop.eup %2935  ;;  %2955 = vtanh.f32 %v1349_v30  ;;  %v1683_v56 = vadd.f32 0.5, %v1651_v22  ;;  %v1594_v28 = vmul.f32 0.5, %v1484_v23 }
 0x315   : > { %v2938_v32 = vpop.eup %2937  ;;  %v1714_v35 = vmul.f32 %v4159_v7, %v1682_v59  ;;  %v1652_v53 = vmul.f32 0.5, %v2936_v36  ;;  %v1595_v5 = vmul.f32 0.5, %v1486_v16  ;;  %v1489_v41 = vpop.f32.mrb[42].mxu1 }
 0x316   : > { %v4209_v12 = vpop.eup %2939  ;;  %v1653_v47 = vmul.f32 0.5, %v2938_v32  ;;  %2957 = vtanh.f32 %v1594_v28  ;;  %v1490_v1 = vadd.f32 %v1489_v41, %v4149_v8  ;;  %v1491_v3 = vpop.f32.mrb[43].mxu1  ;;  %v1715_v19 = vmul.f32 %v4162_v52, %v1683_v56 }
 0x317   : > { %v4213_v63 = vpop.eup %2941  ;;  %v1684_v9 = vadd.f32 0.5, %v1652_v53  ;;  %2959 = vtanh.f32 %v1595_v5  ;;  %v1492_v31 = vadd.f32 %v1491_v3, %v4152_v11  ;;  %v1359_v56 = vadd.f32 %v4106_v37, %v4122_v21 }
 0x318   : > { %v2944_v33 = vpop.eup %2943  ;;  %2961 = vtanh.f32 %v1353_v51  ;;  %v1685_v7 = vadd.f32 0.5, %v1653_v47  ;;  %v1596_v27 = vmul.f32 0.5, %v1490_v1  ;;  %v1361_v5 = vadd.f32 %v4108_v62, %v4125_v61 }
 0x319   : > { %v2946_v30 = vpop.eup %2945  ;;  %2963 = vtanh.f32 %v1355_v34  ;;  %v1716_v39 = vmul.f32 %v4165_v13, %v1684_v9  ;;  %v1654_v14 = vmul.f32 0.5, %v2944_v33  ;;  %v1597_v43 = vmul.f32 0.5, %v1492_v31  ;;  %v1495_v50 = vpop.f32.mrb[44].mxu1 }
 0x31a   : > { %v4217_v2 = vpop.eup %2947  ;;  %v1655_v52 = vmul.f32 0.5, %v2946_v30  ;;  %2965 = vtanh.f32 %v1596_v27  ;;  %v1496_v22 = vadd.f32 %v1495_v50, %v4149_v8  ;;  %v1497_v23 = vpop.f32.mrb[45].mxu1  ;;  %v1717_v26 = vmul.f32 %v4168_v18, %v1685_v7 }
 0x31b   : > { %v4221_v59 = vpop.eup %2949  ;;  %v1686_v16 = vadd.f32 0.5, %v1654_v14  ;;  %2967 = vtanh.f32 %v1597_v43  ;;  %v1498_v36 = vadd.f32 %v1497_v23, %v4152_v11  ;;  %v2639_v51 = vpack.c.bf16 %v1716_v39, %v1714_v35 }
 0x31c   : > { %v2952_v13 = vpop.eup %2951  ;;  %v1687_v28 = vadd.f32 0.5, %v1655_v52  ;;  %v1598_v32 = vmul.f32 0.5, %v1496_v22  ;;  %v2637_v34 = vpack.c.bf16 %v1717_v26, %v1715_v19 }
 0x31d   : > { %v2954_v53 = vpop.eup %2953  ;;  %v1718_v18 = vmul.f32 %v4172_v20, %v1686_v16  ;;  %v1656_v41 = vmul.f32 0.5, %v2952_v13  ;;  %v1599_v47 = vmul.f32 0.5, %v1498_v36  ;;  %v1501_v1 = vpop.f32.mrb[46].mxu1  ;;  %v1365_v13 = vadd.f32 %v4110_v49, %v4122_v21 }
 0x31e   : > { %v4229_v3 = vpop.eup %2955  ;;  %v1657_v9 = vmul.f32 0.5, %v2954_v53  ;;  %2969 = vtanh.f32 %v1598_v32  ;;  %v1502_v35 = vadd.f32 %v1501_v1, %v4149_v8  ;;  %v1503_v31 = vpop.f32.mrb[47].mxu1  ;;  %2638 = vmatprep.subr.bf16.mxu0 %v2637_v34  ;;  %v1719_v37 = vmul.f32 %v4176_v38, %v1687_v28 }
 0x31f   : > { %v1688_v19 = vadd.f32 0.5, %v1656_v41  ;;  %2971 = vtanh.f32 %v1599_v47  ;;  %v1504_v33 = vadd.f32 %v1503_v31, %v4152_v11  ;;  %2640 = vmatpush1.bf16.xpose.msra.mxu0 %v2639_v51  ;;  %v1367_v53 = vadd.f32 %v4112_v24, %v4125_v61 }
 0x320   : > { %v2958_v62 = vpop.eup %2957  ;;  %2973 = vtanh.f32 %v1359_v56  ;;  %v1689_v20 = vadd.f32 0.5, %v1657_v9  ;;  %v1600_v7 = vmul.f32 0.5, %v1502_v35 }
 0x321   : > { %v2960_v27 = vpop.eup %2959  ;;  %2975 = vtanh.f32 %v1361_v5  ;;  %v1720_v30 = vmul.f32 %v4179_v57, %v1688_v19  ;;  %v1658_v39 = vmul.f32 0.5, %v2958_v62  ;;  %v1601_v14 = vmul.f32 0.5, %v1504_v33  ;;  %v1507_v43 = vpop.f32.mrb[48].mxu1 }
 0x322   : > { %v4235_v50 = vpop.eup %2961  ;;  %v1659_v52 = vmul.f32 0.5, %v2960_v27  ;;  %2977 = vtanh.f32 %v1600_v7  ;;  %v1508_v38 = vadd.f32 %v1507_v43, %v4149_v8  ;;  %v1509_v22 = vpop.f32.mrb[49].mxu1  ;;  %v1721_v23 = vmul.f32 %v4182_v6, %v1689_v20 }
 0x323   : > { %v4239_v26 = vpop.eup %2963  ;;  %v1690_v16 = vadd.f32 0.5, %v1658_v39  ;;  %2979 = vtanh.f32 %v1601_v14  ;;  %v1510_v36 = vadd.f32 %v1509_v22, %v4152_v11  ;;  %v2643_v51 = vpack.c.bf16 %v1720_v30, %v1718_v18 }
 0x324   : > { %v2966_v57 = vpop.eup %2965  ;;  %v1691_v56 = vadd.f32 0.5, %v1659_v52  ;;  %v1602_v28 = vmul.f32 0.5, %v1508_v38  ;;  %v2641_v32 = vpack.c.bf16 %v1721_v23, %v1719_v37  ;;  %v1371_v23 = vadd.f32 %v4117_v17, %v4122_v21 }
 0x325   : > { %v2968_v34 = vpop.eup %2967  ;;  %v1722_v6 = vmul.f32 %v4186_v46, %v1690_v16  ;;  %v1660_v5 = vmul.f32 0.5, %v2966_v57  ;;  %v1603_v41 = vmul.f32 0.5, %v1510_v36  ;;  %v1513_v47 = vpop.f32.mrb[50].mxu1 }
 0x326   : > { %v1661_v1 = vmul.f32 0.5, %v2968_v34  ;;  %2981 = vtanh.f32 %v1602_v28  ;;  %v1514_v18 = vadd.f32 %v1513_v47, %v4149_v8  ;;  %v1515_v9 = vpop.f32.mrb[51].mxu1  ;;  %2642 = vmatprep.subr.bf16.mxu0 %v2641_v32  ;;  %v1723_v49 = vmul.f32 %v4190_v60, %v1691_v56 }
 0x327   : > { %v1692_v35 = vadd.f32 0.5, %v1660_v5  ;;  %2983 = vtanh.f32 %v1603_v41  ;;  %v1516_v31 = vadd.f32 %v1515_v9, %v4152_v11  ;;  %2644 = vmatpush1.bf16.xpose.msra.mxu0 %v2643_v51 }
 0x328   : > { %v2970_v37 = vpop.eup %2969  ;;  %2985 = vtanh.f32 %v1365_v13  ;;  %v1693_v24 = vadd.f32 0.5, %v1661_v1  ;;  %v1604_v46 = vmul.f32 0.5, %v1514_v18  ;;  %v1373_v13 = vadd.f32 %v4119_v54, %v4125_v61 }
 0x329   : > { %v2972_v19 = vpop.eup %2971  ;;  %2987 = vtanh.f32 %v1367_v53  ;;  %v1724_v33 = vmul.f32 %v4193_v25, %v1692_v35  ;;  %v1662_v62 = vmul.f32 0.5, %v2970_v37  ;;  %v1605_v20 = vmul.f32 0.5, %v1516_v31  ;;  %v1519_v7 = vpop.f32.mrb[52].mxu1 }
 0x32a   : > { %v4251_v27 = vpop.eup %2973  ;;  %v1663_v30 = vmul.f32 0.5, %v2972_v19  ;;  %2989 = vtanh.f32 %v1604_v46  ;;  %v1520_v60 = vadd.f32 %v1519_v7, %v4149_v8  ;;  %v1521_v39 = vpop.f32.mrb[53].mxu1  ;;  %v1725_v14 = vmul.f32 %v4198_v4, %v1693_v24 }
 0x32b   : > { %v4255_v43 = vpop.eup %2975  ;;  %v1694_v52 = vadd.f32 0.5, %v1662_v62  ;;  %2991 = vtanh.f32 %v1605_v20  ;;  %v1522_v38 = vadd.f32 %v1521_v39, %v4152_v11  ;;  %v2647_v22 = vpack.c.bf16 %v1724_v33, %v1722_v6 }
 0x32c   : > { %v2978_v25 = vpop.eup %2977  ;;  %v1695_v16 = vadd.f32 0.5, %v1663_v30  ;;  %v1606_v36 = vmul.f32 0.5, %v1520_v60  ;;  %v2645_v51 = vpack.c.bf16 %v1725_v14, %v1723_v49  ;;  %v1377_v7 = vadd.f32 %v4127_v10, %v4122_v21 }
 0x32d   : > { %v2980_v57 = vpop.eup %2979  ;;  %v1726_v4 = vmul.f32 %v4201_v55, %v1694_v52  ;;  %v1664_v56 = vmul.f32 0.5, %v2978_v25  ;;  %v1607_v28 = vmul.f32 0.5, %v1522_v38  ;;  %v1525_v32 = vpop.f32.mrb[54].mxu1  ;;  %v1379_v52 = vadd.f32 %v4129_v29, %v4125_v61 }
 0x32e   : > { %v1665_v34 = vmul.f32 0.5, %v2980_v57  ;;  %2993 = vtanh.f32 %v1606_v36  ;;  %v1526_v53 = vadd.f32 %v1525_v32, %v4149_v8  ;;  %v1527_v6 = vpop.f32.mrb[55].mxu1  ;;  %2646 = vmatprep.subr.bf16.mxu0 %v2645_v51  ;;  %v1727_v17 = vmul.f32 %v4209_v12, %v1695_v16 }
 0x32f   : > { %v1696_v5 = vadd.f32 0.5, %v1664_v56  ;;  %2995 = vtanh.f32 %v1607_v28  ;;  %v1528_v41 = vadd.f32 %v1527_v6, %v4152_v11  ;;  %2648 = vmatpush1.bf16.xpose.msra.mxu0 %v2647_v22 }
 0x330   : > { %v2982_v47 = vpop.eup %2981  ;;  %2997 = vtanh.f32 %v1371_v23  ;;  %v1697_v54 = vadd.f32 0.5, %v1665_v34  ;;  %v1608_v55 = vmul.f32 0.5, %v1526_v53 }
 0x331   : > { %v2984_v1 = vpop.eup %2983  ;;  %2999 = vtanh.f32 %v1373_v13  ;;  %v1728_v18 = vmul.f32 %v4213_v63, %v1696_v5  ;;  %v1666_v9 = vmul.f32 0.5, %v2982_v47  ;;  %v1609_v49 = vmul.f32 0.5, %v1528_v41  ;;  %v1531_v35 = vpop.f32.mrb[56].mxu1 }
 0x332   : > { %v4267_v31 = vpop.eup %2985  ;;  %v1667_v37 = vmul.f32 0.5, %v2984_v1  ;;  %3001 = vtanh.f32 %v1608_v55  ;;  %v1532_v12 = vadd.f32 %v1531_v35, %v4149_v8  ;;  %v1533_v24 = vpop.f32.mrb[57].mxu1  ;;  %v1729_v46 = vmul.f32 %v4217_v2, %v1697_v54 }
 0x333   : > { %v4271_v19 = vpop.eup %2987  ;;  %v1698_v33 = vadd.f32 0.5, %v1666_v9  ;;  %3003 = vtanh.f32 %v1609_v49  ;;  %v1534_v62 = vadd.f32 %v1533_v24, %v4152_v11  ;;  %v2651_v20 = vpack.c.bf16 %v1728_v18, %v1726_v4 }
 0x334   : > { %v2990_v63 = vpop.eup %2989  ;;  %v1699_v30 = vadd.f32 0.5, %v1667_v37  ;;  %v1610_v60 = vmul.f32 0.5, %v1532_v12  ;;  %v2649_v39 = vpack.c.bf16 %v1729_v46, %v1727_v17  ;;  %v1385_v37 = vadd.f32 %v4137_v42, %v4125_v61 }
 0x335   : > { %v2992_v14 = vpop.eup %2991  ;;  %v1730_v2 = vmul.f32 %v4221_v59, %v1698_v33  ;;  %v1668_v38 = vmul.f32 0.5, %v2990_v63  ;;  %v1611_v22 = vmul.f32 0.5, %v1534_v62  ;;  %v1537_v25 = vpop.f32.mrb[58].mxu1 }
 0x336   : > { %v1669_v23 = vmul.f32 0.5, %v2992_v14  ;;  %3005 = vtanh.f32 %v1610_v60  ;;  %v1538_v16 = vadd.f32 %v1537_v25, %v4149_v8  ;;  %v1539_v36 = vpop.f32.mrb[59].mxu1  ;;  %2650 = vmatprep.subr.bf16.mxu0 %v2649_v39  ;;  %v1731_v10 = vmul.f32 %v4229_v3, %v1699_v30 }
 0x337   : > { %v1700_v51 = vadd.f32 0.5, %v1668_v38  ;;  %3007 = vtanh.f32 %v1611_v22  ;;  %v1540_v57 = vadd.f32 %v1539_v36, %v4152_v11  ;;  %2652 = vmatpush1.bf16.xpose.msra.mxu0 %v2651_v20  ;;  %v1391_v22 = vadd.f32 %v4147_v58, %v4125_v61 }
 0x338   : > { %v2994_v13 = vpop.eup %2993  ;;  %3009 = vtanh.f32 %v1377_v7  ;;  %v1701_v29 = vadd.f32 0.5, %v1669_v23  ;;  %v1612_v59 = vmul.f32 0.5, %v1538_v16 }
 0x339   : > { %v2996_v4 = vpop.eup %2995  ;;  %3011 = vtanh.f32 %v1379_v52  ;;  %v1732_v56 = vmul.f32 %v4235_v50, %v1700_v51  ;;  %v1670_v28 = vmul.f32 0.5, %v2994_v13  ;;  %v1613_v32 = vmul.f32 0.5, %v1540_v57  ;;  %v1543_v34 = vpop.f32.mrb[60].mxu1 }
 0x33a   : > { %v2998_v53 = vpop.eup %2997  ;;  %v1671_v6 = vmul.f32 0.5, %v2996_v4  ;;  %3013 = vtanh.f32 %v1612_v59  ;;  %v1544_v3 = vadd.f32 %v1543_v34, %v4149_v8  ;;  %v1545_v17 = vpop.f32.mrb[61].mxu1  ;;  %v1733_v5 = vmul.f32 %v4239_v26, %v1701_v29 }
 0x33b   : > { %v3000_v41 = vpop.eup %2999  ;;  %v1702_v47 = vadd.f32 0.5, %v1670_v28  ;;  %3015 = vtanh.f32 %v1613_v32  ;;  %v1546_v54 = vadd.f32 %v1545_v17, %v4152_v11  ;;  %v2655_v55 = vpack.c.bf16 %v1732_v56, %v1730_v2 }
 0x33c   : > { %v3002_v1 = vpop.eup %3001  ;;  %v1383_v50 = vadd.f32 %v4134_v40, %v4122_v21  ;;  %v1703_v18 = vadd.f32 0.5, %v1671_v6  ;;  %v1614_v9 = vmul.f32 0.5, %v1544_v3  ;;  %v2653_v49 = vpack.c.bf16 %v1733_v5, %v1731_v10 }
 0x33d   : > { %v3004_v35 = vpop.eup %3003  ;;  %v1734_v12 = vmul.f32 %v4251_v27, %v1702_v47  ;;  %v1672_v26 = vmul.f32 0.5, %v3002_v1  ;;  %v1615_v24 = vmul.f32 0.5, %v1546_v54  ;;  %v1549_v46 = vpop.f32.mrb[62].mxu1  ;;  %v1389_v2 = vadd.f32 %v4144_v48, %v4122_v21 }
 0x33e   : > { %v1673_v33 = vmul.f32 0.5, %v3004_v35  ;;  %3017 = vtanh.f32 %v1614_v9  ;;  %v1550_v62 = vadd.f32 %v1549_v46, %v4149_v8  ;;  %v1551_v20 = vpop.f32.mrb[63].mxu1  ;;  %2654 = vmatprep.subr.bf16.mxu0 %v2653_v49  ;;  %v1735_v40 = vmul.f32 %v4255_v43, %v1703_v18 }
 0x33f   : > { %v1704_v63 = vadd.f32 0.5, %v1672_v26  ;;  %3019 = vtanh.f32 %v1615_v24  ;;  %v1552_v7 = vadd.f32 %v1551_v20, %v4152_v11  ;;  %2656 = vmatpush1.bf16.xpose.msra.mxu0 %v2655_v55  ;;  %v1761_v26 = vrot.slane %v4088_v0, %v4612_v15  ;;  %v1844_v0 = vld [vmem:[#allocation3] sm:$0x1] }
 0x340   : > { %v3006_v30 = vpop.eup %3005  ;;  %3021 = vtanh.f32 %v1383_v50  ;;  %v1705_v42 = vadd.f32 0.5, %v1673_v33  ;;  %v1616_v27 = vmul.f32 0.5, %v1550_v62  ;;  %v4614_v24 = vlaneseq  ;;  %v1751_v33 = vpop.permute.xlu0 %1750 }
 0x341   : > { %v3008_v60 = vpop.eup %3007  ;;  %3023 = vtanh.f32 %v1385_v37  ;;  %v1736_v39 = vmul.f32 %v4267_v31, %v1704_v63  ;;  %v1674_v14 = vmul.f32 0.5, %v3006_v30  ;;  %v1617_v52 = vmul.f32 0.5, %v1552_v7 }
 0x342   : > { %v3010_v8 = vpop.eup %3009  ;;  %v1675_v43 = vmul.f32 0.5, %v3008_v60  ;;  %3025 = vtanh.f32 %v1616_v27  ;;  %v1737_v38 = vmul.f32 %v4271_v19, %v1705_v42  ;;  %v1840_v46 = vand.u32 127, %v4614_v24 }
 0x343   : > { %v3012_v11 = vpop.eup %3011  ;;  %v1706_v25 = vadd.f32 0.5, %v1674_v14  ;;  %3027 = vtanh.f32 %v1617_v52  ;;  %v2659_v23 = vpack.c.bf16 %v1736_v39, %v1734_v12  ;;  %v1756_v20 = vrot.slane %v1751_v33, %v4612_v15  ;;  %v2022_v33 = vld [vmem:[%s4530_s7 + $0xc0] sm:$0xff] (!%p2370_p9) }
 0x344   : > { %v3014_v16 = vpop.eup %3013  ;;  %v1707_v36 = vadd.f32 0.5, %v1675_v43  ;;  %v2657_v31 = vpack.c.bf16 %v1737_v38, %v1735_v40  ;;  %3029 = vtanh.f32 %v1389_v2  ;;  %v1841_v62 = vadd.s32 %v1840_v46, %v3602_v45  ;;  %v2005_v46 = vld [vmem:[%s4530_s7 + $0x38] sm:$0xff] (!%p2370_p9) }
 0x345   : > { %v3016_v10 = vpop.eup %3015  ;;  %v1738_v51 = vmul.f32 %v2998_v53, %v1706_v25  ;;  %v1676_v57 = vmul.f32 0.5, %v3014_v16  ;;  %3031 = vtanh.f32 %v1391_v22  ;;  %v1865_v22 = vld [vmem:[#allocation4] sm:$0x1]  ;;  %vm4315_vm3 = vcmp.lt.s32.totalorder %v4614_v24, 256  ;;  %v2004_v24 = vld [vmem:[%s4530_s7 + $0x30] sm:$0xff] (!%p2370_p9) }
 0x346   : > { %v1677_v13 = vmul.f32 0.5, %v3016_v10  ;;  %2658 = vmatprep.subr.bf16.mxu0 %v2657_v31  ;;  %v1739_v21 = vmul.f32 %v3000_v41, %v1707_v36  ;;  %vm1842_vm13 = vcmp.lt.s32.totalorder %v1841_v62, 500  ;;  %v3269_v36 = vmov 1966171168   ;;  %v2023_v62 = vld [vmem:[%s4530_s7 + $0xc8] sm:$0xff] (!%p2370_p9) }
 0x347   : > { %v1708_v48 = vadd.f32 0.5, %v1676_v57  ;;  %2660 = vmatpush1.bf16.xpose.msra.mxu0 %v2659_v23  ;;  %v1959_v31 = vunpack.c.l.s4 %v3269_v36 }
 0x348   : > { %v3018_v19 = vpop.eup %3017  ;;  %v1709_v29 = vadd.f32 0.5, %v1677_v13 }
 0x349   : > { %v3020_v59 = vpop.eup %3019  ;;  %v1740_v61 = vmul.f32 %v3010_v8, %v1708_v48  ;;  %v1678_v58 = vmul.f32 0.5, %v3018_v19  ;;  %v1960_v10 = vunpack.c.0.s8 %v1959_v31 }
 0x34a   : > { %v3022_v4 = vpop.eup %3021  ;;  %v1679_v56 = vmul.f32 0.5, %v3020_v59  ;;  %v1741_v28 = vmul.f32 %v3012_v11, %v1709_v29  ;;  %v1873_v29 = vld [vmem:[#allocation2] sm:$0x3] }
 0x34b   : > { %v3024_v32 = vpop.eup %3023  ;;  %v1710_v34 = vadd.f32 0.5, %v1678_v58  ;;  %v2663_v6 = vpack.c.bf16 %v1740_v61, %v1738_v51  ;;  %v1963_v13 = vsub.s32 %v1960_v10, %v4613_v44  ;;  %v4617_v10 = vld [vmem:[#allocation25_spill] sm:$0xff] (!%p2370_p9) }
 0x34c   : > { %v3026_v53 = vpop.eup %3025  ;;  %v1711_v3 = vadd.f32 0.5, %v1679_v56  ;;  %v2661_v17 = vpack.c.bf16 %v1741_v28, %v1739_v21  ;;  %v2015_v28 = vld [vmem:[%s4530_s7 + $0x88] sm:$0xff] (!%p2370_p9) }
 0x34d   : > { %v3028_v5 = vpop.eup %3027  ;;  %v1742_v47 = vmul.f32 %v3022_v4, %v1710_v34  ;;  %v1680_v41 = vmul.f32 0.5, %v3026_v53  ;;  %v1999_v53 = vld [vmem:[%s4530_s7 + $0x8] sm:$0xff] (!%p2370_p9) }
 0x34e   : > { %v1681_v54 = vmul.f32 0.5, %v3028_v5  ;;  %2662 = vmatprep.subr.bf16.mxu0 %v2661_v17  ;;  %v1743_v55 = vmul.f32 %v3024_v32, %v1711_v3  ;;  %v3030_v50 = vpop.eup %3029  ;;  %v3270_v32 = vmov (!%p2370_p9), 0   ;;  %v2016_v3 = vld [vmem:[%s4530_s7 + $0x90] sm:$0xff] (!%p2370_p9)  ;;  %v2017_v5 = vld [vmem:[%s4530_s7 + $0x98] sm:$0xff] (!%p2370_p9) }
 0x34f   : > { %v1712_v1 = vadd.f32 0.5, %v1680_v41  ;;  %2664 = vmatpush1.bf16.xpose.msra.mxu0 %v2663_v6  ;;  %v3032_v9 = vpop.eup %3031  ;;  %v1998_v6 = vld [vmem:[%s4530_s7] sm:$0xff] (!%p2370_p9)  ;;  %v2001_v41 = vld [vmem:[%s4530_s7 + $0x18] sm:$0xff] (!%p2370_p9) }
 0x350   : > { %v1713_v18 = vadd.f32 0.5, %v1681_v54  ;;  %v2719_v17 = vpack.c.bf16 (!%p2370_p9), %v1999_v53, %v1998_v6  ;;  %v2721_v54 = vpack.c.bf16 (!%p2370_p9), %v2017_v5, %v2016_v3 }
 0x351   : > { %v1744_v49 = vmul.f32 %v3030_v50, %v1712_v1  ;;  %v2019_v1 = vld [vmem:[%s4530_s7 + $0xa8] sm:$0xff] (!%p2370_p9) }
 0x352   : > { %v1745_v35 = vmul.f32 %v3032_v9, %v1713_v18  ;;  %v2002_v9 = vld [vmem:[%s4530_s7 + $0x20] sm:$0xff] (!%p2370_p9) }
 0x353   : > { %v2667_v37 = vpack.c.bf16 %v1744_v49, %v1742_v47  ;;  %v2000_v47 = vld [vmem:[%s4530_s7 + $0x10] sm:$0xff] (!%p2370_p9)  ;;  %v2003_v49 = vld [vmem:[%s4530_s7 + $0x28] sm:$0xff] (!%p2370_p9) }
 0x354   : > { %v2665_v12 = vpack.c.bf16 %v1745_v35, %v1743_v55  ;;  %v2018_v55 = vld [vmem:[%s4530_s7 + $0xa0] sm:$0xff] (!%p2370_p9)  ;;  %v2723_v50 = vpack.c.bf16 (!%p2370_p9), %v2001_v41, %v2000_v47  ;;  %v2020_v35 = vld [vmem:[%s4530_s7 + $0xb0] sm:$0xff] (!%p2370_p9) }
 0x355   : > { %v2725_v18 = vpack.c.bf16 (!%p2370_p9), %v2019_v1, %v2018_v55 }
 0x356   : > { %2666 = vmatprep.subr.bf16.mxu0 %v2665_v12  ;;  %v2727_v12 = vpack.c.bf16 (!%p2370_p9), %v2003_v49, %v2002_v9 }
 0x357   : > { %2668 = vmatpush1.bf16.xpose.msra.mxu0 %v2667_v37  ;;  %v2021_v37 = vld [vmem:[%s4530_s7 + $0xb8] sm:$0xff] (!%p2370_p9) }
 0x35e   : > { %1833 = vmatmul.mubr.f32.vlgmr.msra.gmra.mrb[32].mxu0 %v1761_v26  ;;  %v2729_v26 = vpack.c.bf16 (!%p2370_p9), %v2021_v37, %v2020_v35 }
 0x431   : > { %v1834_v40 = vpop.f32.mrb[32].mxu0 }
 0x432   : > { %v1835_v63 = vadd.f32 %v1834_v40, %v1756_v20  ;;  %v1836_v7 = vpop.f32.mrb[33].mxu0  ;;  %v2731_v20 = vpack.c.bf16 (!%p2370_p9), %v2005_v46, %v2004_v24  ;;  %v2733_v40 = vpack.c.bf16 (!%p2370_p9), %v2023_v62, %v2022_v33 }
 0x433   : > { %v2007_v7 = vld [vmem:[%s4530_s7 + $0x48] sm:$0xff] (!%p2370_p9) }
 0x434   : > { %1838 = vst [vmem:[%s436_s13] sm:$0x1] %v1835_v63  ;;  %v1843_v30 = vsel %vm1842_vm13, %v1835_v63, -1e+30  ;;  %v2006_v63 = vld [vmem:[%s4530_s7 + $0x40] sm:$0xff] (!%p2370_p9) }
 0x435   : > { %v1846_v42 = vsel %vm1845_vm14, %v1843_v30, -inf }
 0x436   : > { %1847 = vmax.xlane.f32.xlu0 %v1846_v42  ;;  %v2025_v42 = vld [vmem:[%s4530_s7 + $0xd8] sm:$0xff] (!%p2370_p9) }
 0x4c3   : > { %v1848_v27 = vpop.xlane.xlu0 %1847 }
 0x4c4   : > { %v1849_v60 = vmax.f32 %v1844_v0, %v1848_v27 }
 0x4c6   : > { %v1850_v39 = vsub.f32 %v1844_v0, %v1849_v60  ;;  %1979 = vst.msk [vmem:[#allocation3] sm:$0x1] %vm1871_vm2, %v1849_v60  ;;  %1855 = vperm.xlu1 %2904, %v1849_v60   ;;  %v2735_v0 = vpack.c.bf16 (!%p2370_p9), %v2007_v7, %v2006_v63  ;;  %v2008_v60 = vld [vmem:[%s4530_s7 + $0x50] sm:$0xff] (!%p2370_p9) }
 0x4c8   : > { %v1851_v45 = vmul.f32 1.442695, %v1850_v39  ;;  %v2009_v39 = vld [vmem:[%s4530_s7 + $0x58] sm:$0xff] (!%p2370_p9) }
 0x4ca   : > { %3033 = vpow2.f32 %v1851_v45  ;;  %v2026_v45 = vld [vmem:[%s4530_s7 + $0xe0] sm:$0xff] (!%p2370_p9) }
 0x4d4   : > { %v3034_v14 = vpop.eup %3033 }
 0x4d5   : > { %1876 = vperm.xlu0 %2903, %v3034_v14   ;;  %v1866_v25 = vmul.f32 %v3034_v14, %v1865_v22  ;;  %v2027_v14 = vld [vmem:[%s4530_s7 + $0xe8] sm:$0xff] (!%p2370_p9) }
 0x4d9   : > { %3037 = vset.pattern.permute.xlu0 (!%p2370_p9), %v3270_v32 }
 0x545   : > { %v1856_v52 = vpop.permute.xlu1 %1855 }
 0x546   : > { %v1861_v8 = vrot.slane %v1856_v52, %v4612_v15  ;;  %v2739_v52 = vpack.c.bf16 (!%p2370_p9), %v2009_v39, %v2008_v60 }
 0x548   : > { %v1862_v2 = vsub.f32 %v1843_v30, %v1861_v8  ;;  %v2024_v30 = vld [vmem:[%s4530_s7 + $0xd0] sm:$0xff] (!%p2370_p9)  ;;  %v2741_v8 = vpack.c.bf16 (!%p2370_p9), %v2027_v14, %v2026_v45 }
 0x549   : > { %v2737_v27 = vpack.c.bf16 (!%p2370_p9), %v2025_v42, %v2024_v30 }
 0x54a   : > { %v1863_v43 = vmul.f32 1.442695, %v1862_v2  ;;  %v2010_v2 = vld [vmem:[%s4530_s7 + $0x60] sm:$0xff] (!%p2370_p9) }
 0x54c   : > { %3035 = vpow2.f32 %v1863_v43  ;;  %v2011_v43 = vld [vmem:[%s4530_s7 + $0x68] sm:$0xff] (!%p2370_p9) }
 0x54d   : > { %v2743_v22 = vpack.c.bf16 (!%p2370_p9), %v2011_v43, %v2010_v2 }
 0x554   : > { %v1877_v51 = vpop.permute.xlu0 %1876 }
 0x555   : > { %v1882_v48 = vrot.slane %v1877_v51, %v4612_v15  ;;  %v2014_v15 = vld [vmem:[%s4530_s7 + $0x80] sm:$0xff] (!%p2370_p9) }
 0x556   : > { %v3036_v38 = vpop.eup %3035  ;;  %v2717_v34 = vpack.c.bf16 (!%p2370_p9), %v2015_v28, %v2014_v15 }
 0x557   : > { %1949 = vmatmul.mubr.f32.vlgmr.msra.gmra.mrb[64].mxu1 %v3036_v38  ;;  %v1867_v11 = vsel %vm1845_vm14, %v3036_v38, 0.0  ;;  %v1883_v61 = vmul.f32 %v1882_v48, %v1873_v29  ;;  %v2028_v38 = vld [vmem:[%s4530_s7 + $0xf0] sm:$0xff] (!%p2370_p9)  ;;  %v4618_v48 = vld [vmem:[#allocation26_spill] sm:$0xff] (!%p2370_p9) }
 0x558   : > { %1868 = vadd.xlane.f32.xlu1 %v1867_v11  ;;  %2718 = vmatprep.subr.bf16.mxu0 (!%p2370_p9), %v2717_v34  ;;  %v2029_v11 = vld [vmem:[%s4530_s7 + $0xf8] sm:$0xff] (!%p2370_p9) }
 0x559   : > { %2720 = vmatpush3.bf16.msra.mxu0 (!%p2370_p9), %v2719_v17 }
 0x55a   : > { %2722 = vmatprep.subr.bf16.mxu0 (!%p2370_p9), %v2721_v54 }
 0x55d   : > { %2724 = vmatpush3.bf16.msra.mxu0 (!%p2370_p9), %v2723_v50 }
 0x55e   : > { %2726 = vmatprep.subr.bf16.mxu0 (!%p2370_p9), %v2725_v18 }
 0x561   : > { %2728 = vmatpush3.bf16.msra.mxu0 (!%p2370_p9), %v2727_v12 }
 0x562   : > { %2730 = vmatprep.subr.bf16.mxu0 (!%p2370_p9), %v2729_v26 }
 0x565   : > { %2732 = vmatpush3.bf16.msra.mxu0 (!%p2370_p9), %v2731_v20 }
 0x566   : > { %2734 = vmatprep.subr.bf16.mxu0 (!%p2370_p9), %v2733_v40 }
 0x569   : > { %2736 = vmatpush3.bf16.msra.mxu0 (!%p2370_p9), %v2735_v0 }
 0x56a   : > { %2738 = vmatprep.subr.bf16.mxu0 (!%p2370_p9), %v2737_v27 }
 0x56d   : > { %2740 = vmatpush3.bf16.msra.mxu0 (!%p2370_p9), %v2739_v52 }
 0x56e   : > { %2742 = vmatprep.subr.bf16.mxu0 (!%p2370_p9), %v2741_v8 }
 0x571   : > { %2744 = vmatpush3.bf16.msra.mxu0 (!%p2370_p9), %v2743_v22 }
 0x5e5   : > { %v1869_v23 = vpop.xlane.xlu1 %1868 }
 0x5e6   : > { %v1870_v16 = vadd.f32 %v1869_v23, %v1866_v25  ;;  %v2745_v25 = vpack.c.bf16 (!%p2370_p9), %v2029_v11, %v2028_v38  ;;  %v2012_v23 = vld [vmem:[%s4530_s7 + $0x70] sm:$0xff] (!%p2370_p9) }
 0x5e8   : > { %1872 = vst.msk [vmem:[#allocation4] sm:$0x1] %vm1871_vm2, %v1870_v16  ;;  %v2013_v16 = vld [vmem:[%s4530_s7 + $0x78] sm:$0xff] (!%p2370_p9)  ;;  %2746 = vmatprep.subr.bf16.mxu0 (!%p2370_p9), %v2745_v25 }
 0x5e9   : > { %v2747_v36 = vpack.c.bf16 (!%p2370_p9), %v2013_v16, %v2012_v23 }
 0x5eb   : > { %2748 = vmatpush3.bf16.msra.mxu0 (!%p2370_p9), %v2747_v36 }
 0x5ef   : > { %v1985_v44 = vld [vmem:[#allocation4] sm:$0x1] (!%p2370_p9) }
 0x5f0   : > { %1988 = vperm.xlu0 (!%p2370_p9), %3037, %v1985_v44  }
 0x62a   : > { %v1950_v57 = vpop.f32.mrb[64].mxu1 }
 0x62b   : > { %v1952_v21 = vpop.f32.mrb[65].mxu1 }
 0x62c   : > { %v1957_v19 = vcombine.low %v1950_v57, %v1952_v21 }
 0x62e   : > { %v1964_v59 = vrot.slane %v1957_v19, %v1963_v13  ;;  %1983 = sbr.rel (%p2370_p9) target bundleno = 1884 (0x75c), region = 76 }
 0x630   : > { %v1971_v58 = vrot.slane %v1964_v59, %v1963_v13 }
 0x632   : > { %v1973_v56 = vadd.f32 %v1971_v58, %v1883_v61  ;;  %v2030_v61 = vld [vmem:[%s4531_s8] sm:$0x1] (!%p2370_p9) }
 0x634   : > { %1978 = vst.msk [vmem:[#allocation2] sm:$0x3] %vm4315_vm3, %v1973_v56 }
 0x63b   : > { %v1984_v57 = vld [vmem:[#allocation2] sm:$0x3] }
 0x66f   : > { %v1989_v31 = vpop.permute.xlu0 %1988 }
 0x670   : > { %v1994_v51 = vrot.slane %v1989_v31, %v4617_v10 }
 0x672   : > { %3038 = vrcp.f32 %v1994_v51 }
 0x67c   : > { %v3039_v13 = vpop.eup %3038 }
 0x67d   : > { %v1996_v21 = vmul.f32 %v3039_v13, %v1984_v57 }
 0x67f   : > { %1997 = vst.msk [vmem:[#allocation15] sm:$0x3] %vm4315_vm3, %v1996_v21  ;;  %v2039_v19 = vrot.slane %v1996_v21, %v4618_v48  ;;  %v2035_v29 = vrot.slane %v1996_v21, %v4617_v10 }
 0x681   : > { %2106 = vmatprep.mubr.f32.mxu0 %v2039_v19 }
 0x682   : > { %2107 = vmatmul.mubr.f32.vlgmr.msra.gmra.mrb[0].mxu0 %v2035_v29 }
 0x755   : > { %v2410_v59 = vpop.f32.mrb[0].mxu0 }
 0x756   : > { %v2411_v58 = vpop.f32.mrb[1].mxu0 }
 0x757   : > { %v2412_v56 = vadd.f32 %v2411_v58, %v2410_v59 }
 0x759   : > { %v2109_v44 = vadd.f32 %v2412_v56, %v2030_v61 }
 0x75b   : > { %2113 = vst.msk [vmem:[#allocation12] sm:$0x1] %vm2112_vm4, %v2109_v44 }
 0x75c PF: > { %s2114_s24 = sand.u32 1, %s3356_s6   ;;  %s2372_s19 = sshll.u32 %s3356_s6, 4 }
 0x75d   : > { %s4431_s14 = scalar_lea.hbm %s4533_s10, %s2372_s19  ;;  %s2138_s17 = sshll.u32 %s436_s13, 4  ;;  %s4435_s17 = int_to_ptr.vmem [resolvable:$true] %s2138_s17 }
 0x75e   : > { %s3271_s11 = smov [#allocation12]   ;;  %s2115_s16 = scalar_lea.sflag [#allocation14], %s2114_s24 }
 0x75f   : > { %s4437_s25 = sshll.u32 %s3271_s11, 4  ;;  %s3124_s18 = scalar_lea.vmem %s4435_s17, 16  ;;  %s2126_s25 = int_to_ptr.vmem [resolvable:$true] %s4437_s25 }
 0x760   : > { %p3125_p10 = scmp.ne.s32.totalorder %s4435_s17, %s3124_s18  ;;  %p4619_p2 = scmp.ne.s32.totalorder %s4569_s30, 0 }
 0x761   : > { %s3272_s28 = smov [#allocation13]  }
 0x762   : > { %p3126_p4 = pnand %p3125_p10, %p4619_p2  ;;  %s3128_s15 = sshll.u32 %s3272_s28, 4  ;;  %s3129_s15 = int_to_ptr.vmem [resolvable:$false] %s3128_s15 }
 0x763   : > { %s3130_s9 = scalar_lea.vmem %s3129_s15, 32  ;;  %p3131_p5 = scmp.lt.s32.totalorder %s4435_s17, %s3129_s15 }
 0x764   : > { %p3127_p8 = pneg %p3126_p4  ;;  %p3132_p6 = scmp.lt.s32.totalorder %s3130_s9, %s3124_s18 }
 0x766   : > { %p3133_p7 = por %p3132_p6, %p3131_p5 }
 0x768   : > { %p3134_p12 = pnand %p3133_p7, %p3127_p8 }
 0x76a   : > { %3137 = shalt.err (!%p3134_p12)
}
 0x76b   : > { %s3138_s23 = scalar_lea.hbm %s4431_s14, 16  ;;  %s3142_s27 = scalar_lea.hbm %s4533_s10, 64 }
 0x76c   : > { %p3139_p11 = scmp.ne.s32.totalorder %s4431_s14, %s3138_s23  ;;  %p3143_p1 = scmp.lt.u32.totalorder %s4431_s14, %s4533_s10 }
 0x76d   : > { %p3144_p3 = scmp.lt.u32.totalorder %s3142_s27, %s3138_s23  ;;  %p3146_p10 = scmp.lt.u32.totalorder %s3138_s23, %s4431_s14 }
 0x76e   : > { %p3140_p13 = pnand %p3139_p11, %p4619_p2 }
 0x76f   : > { %p3145_p9 = por %p3144_p3, %p3143_p1 }
 0x770   : > { %p3141_p0 = pneg %p3140_p13 }
 0x771   : > { %p3147_p4 = por %p3146_p10, %p3145_p9 }
 0x773   : > { %p3148_p8 = pnand %p3147_p4, %p3141_p0 }
 0x775   : > { %3151 = shalt.err (!%p3148_p8)
}
 0x776   : > { %2827 = dma.vmem_to_hbm [thread:$0]  (%p4619_p2), %s4435_s17, 16, %s4431_s14, %s2115_s16  }
 0x777   : > { %s3152_s29 = scalar_lea.vmem %s2126_s25, 16  ;;  %p4620_p6 = scmp.eq.s32.totalorder %s3356_s6, 3 }
 0x778   : > { %p3153_p5 = scmp.ne.s32.totalorder %s2126_s25, %s3152_s29  ;;  %s3158_s26 = scalar_lea.vmem %s2126_s25, 32 }
 0x779   : > { %p3159_p11 = scmp.lt.s32.totalorder %s2126_s25, %s2126_s25  ;;  %p3160_p13 = scmp.lt.s32.totalorder %s3158_s26, %s3152_s29 }
 0x77a   : > { %p3154_p7 = pnand %p3153_p5, %p4620_p6 }
 0x77b   : > { %p3161_p1 = por %p3160_p13, %p3159_p11 }
 0x77c   : > { %p3155_p12 = pneg %p3154_p7 }
 0x77e   : > { %p3162_p3 = pnand %p3161_p1, %p3155_p12 }
 0x780   : > { %3165 = shalt.err (!%p3162_p3)
}
 0x781   : > { %s4621_s30 = sld [smem:[#allocation29_spill]]  ;;  %p4622_p0 = pmov %p4620_p6 }
 0x787   : > { %s3166_s28 = scalar_lea.hbm %s4621_s30, 16 }
 0x788   : > { %p3167_p2 = scmp.ne.s32.totalorder %s4621_s30, %s3166_s28  ;;  %p3172_p4 = scmp.lt.u32.totalorder %s3166_s28, %s4621_s30 }
 0x78a   : > { %p3168_p9 = pnand %p3167_p2, %p4622_p0 }
 0x78c   : > { %p3169_p10 = pneg %p3168_p9 }
 0x78e   : > { %p3174_p8 = pnand %p3172_p4, %p3169_p10 }
 0x790   : > { %3177 = shalt.err (!%p3174_p8)
}
 0x791   : > { %p4623_p5 = pmov %p4622_p0  ;;  %s3273_s13 = smov [#allocation15]  }
 0x792   : > { %s2149_s12 = sshll.u32 %s3273_s13, 4  ;;  %p4624_p7 = pmov %p4622_p0  ;;  %s2150_s12 = int_to_ptr.vmem [resolvable:$true] %s2149_s12 }
 0x793   : > { %2826 = dma.vmem_to_hbm [thread:$0]  (%p4623_p5), %s2126_s25, 16, %s4621_s30, [#allocation8]  }
 0x794   : > { %s3178_s27 = scalar_lea.vmem %s2150_s12, 32  ;;  %p3185_p13 = scmp.lt.s32.totalorder %s2150_s12, %s2150_s12 }
 0x795   : > { %p3179_p6 = scmp.ne.s32.totalorder %s2150_s12, %s3178_s27  ;;  %p3186_p1 = scmp.lt.s32.totalorder %s3178_s27, %s3178_s27 }
 0x797   : > { %p3180_p12 = pnand %p3179_p6, %p4624_p7  ;;  %p3187_p3 = por %p3186_p1, %p3185_p13 }
 0x799   : > { %p3181_p11 = pneg %p3180_p12 }
 0x79b   : > { %p3188_p2 = pnand %p3187_p3, %p3181_p11 }
 0x79d   : > { %3191 = shalt.err (!%p3188_p2)
}
 0x79e   : > { %s4625_s29 = sld [smem:[#allocation30_spill]]  ;;  %p4626_p9 = pmov %p4623_p5 }
 0x7a4   : > { %s3192_s26 = scalar_lea.hbm %s4625_s29, 32 }
 0x7a5   : > { %p3193_p0 = scmp.ne.s32.totalorder %s4625_s29, %s3192_s26  ;;  %p3198_p8 = scmp.lt.u32.totalorder %s3192_s26, %s4625_s29 }
 0x7a7   : > { %p3194_p10 = pnand %p3193_p0, %p4626_p9 }
 0x7a9   : > { %p3195_p4 = pneg %p3194_p10 }
 0x7ab   : > { %p3200_p5 = pnand %p3198_p8, %p3195_p4 }
 0x7ad   : > { %3203 = shalt.err (!%p3200_p5)
}
 0x7ae   : > { %p4627_p6 = pmov %p4624_p7 }
 0x7b0   : > { %2829 = dma.vmem_to_hbm [thread:$0]  (%p4627_p6), %s2150_s12, 32, %s4625_s29, [#allocation14]  }
 0x7b1   : > { %p4628_p7 = pmov %p4627_p6 }
 0x7b2   : > { %p4629_p12 = pmov %p4627_p6 }
 0x7b3   : > { %3229 = dma.done.wait (%p4628_p7), [#allocation8], 16  }
 0x7b4   : > { %3231 = vsyncadd (%p4629_p12), [#allocation8], 4294967280  ;;  %p4630_p11 = pmov %p4627_p6 }
 0x7b5   : > { %p4631_p13 = pmov %p4627_p6 }
 0x7b6   : > { %3233 = dma.done.wait (%p4630_p11), [#allocation14], 32  }
 0x7b7   : > { %3235 = vsyncadd (%p4631_p13), [#allocation14], 4294967264 }
 0x7b8 PF: > { %s4632_s14 = sld [smem:[#allocation23_spill]]  ;;  %p2854_p1 = scmp.ge.s32.totalorder %s3254_s22, 2 }
 0x7b9   : > { %s4633_s17 = sadd.s32 4294967294, %s3254_s22  }
 0x7ba   : > { %s2169_s16 = sand.u32 1, %s4633_s17  }
 0x7bb   : > { %s2170_s23 = scalar_lea.sflag [#allocation14], %s2169_s16 }
 0x7be   : > { %p4634_p3 = scmp.ne.s32.totalorder %s4632_s14, 0 }
 0x7c0   : > { %p2843_p2 = pnand %p2854_p1, %p4634_p3 }
 0x7c2   : > { %3237 = dma.done.wait (!%p2843_p2), %s2170_s23, 16  }
 0x7c3   : > { %3239 = vsyncadd (!%p2843_p2), %s2170_s23, 4294967280  ;;  %s4635_s22 = sld [smem:[#allocation21_spill]]  ;;  %s4636_s13 = sld [smem:[#allocation22_spill]] }
 0x7c4   : > { %s4637_s19 = smov %s3246_s20  ;;  %s4638_s20 = smov %s3250_s21 }
 0x7c9   : > { %p29_p0 = scmp.ge.s32.totalorder %s4635_s22, 6   ;;  %s4639_s21 = smov %s4636_s13 }
 0x7cb   :  { %31 = sbr.rel (!%p29_p0) target bundleno = 10 (0xa), region = 134 }
 0x7d2   :  { %2174 = vsyncpa [#allocation7], 1 }
 0x7d3   :  { %2176 = vsyncpa [#allocation7 + $0x1], 1 }
 0x7d4   :  { %2177 = vsyncpa [#allocation10], 1 }
 0x7d5   :  { %2178 = vsyncpa [#allocation8], 1 }
 0x7d6   :  { %2180 = vsyncpa [#allocation8 + $0x1], 1 }
 0x7d7   :  { %2181 = vsyncpa [#allocation14], 1 }
 0x7d8   :  { %2183 = vsyncpa [#allocation14 + $0x1], 1 }

</bundles_post_ra>
